<compile_context>
chip_gen: v6e
topology: v6e:2x2x1
jax: 0.10.0
libtpu: 0.0.40
codegen_flags: <defaults>
</compile_context>

<pallas_src>
import math

import jax
import jax.numpy as jnp
from jax.experimental import pallas as pl
from jax.experimental.pallas import tpu as pltpu


def _round_up(x: int, m: int) -> int:
    return (x + m - 1) // m * m


def _hw_info():
    """(vmem_capacity_bytes, lowercase device_kind) with safe fallbacks."""
    vmem_cap = 64 << 20  # conservative default (v7x per-TC VMEM)
    kind = ""
    try:
        vmem_cap = int(pltpu.get_tpu_info().vmem_capacity_bytes)
    except Exception:
        pass
    try:
        kind = jax.devices()[0].device_kind
    except Exception:
        pass
    return vmem_cap, (kind or "").lower()


# ---------------------------------------------------------------------------
# Kernels
# ---------------------------------------------------------------------------
def _swiglu_kernel_tiled(x_ref, w13_ref, w2t_ref, o_ref, acc_ref):
    # x_ref:   (tm, D)          in x's dtype (cast to compute dtype in-kernel)
    # w13_ref: (D, 2*tn_ff)     [W1.T tile | W3.T tile]  (fused gate operand)
    # w2t_ref: (tn_ff, D)
    # o_ref:   (tm, D)          output dtype
    # acc_ref: (tm, D) f32      resident accumulator across the DFF grid axis
    j = pl.program_id(1)

    @pl.when(j == 0)
    def _init():
        acc_ref[...] = jnp.zeros_like(acc_ref)

    x = x_ref[...].astype(w13_ref.dtype)
    h = jnp.dot(x, w13_ref[...], preferred_element_type=jnp.float32)  # (tm, 2*tn_ff)
    tn = w2t_ref.shape[0]
    h1 = h[:, :tn]          # static, lane-aligned slices (tn is a multiple of 256)
    h3 = h[:, tn:]
    g = (h1 * jax.nn.sigmoid(h1)) * h3
    acc_ref[...] += jnp.dot(g.astype(w2t_ref.dtype), w2t_ref[...],
                            preferred_element_type=jnp.float32)

    @pl.when(j == pl.num_programs(1) - 1)
    def _finalize():
        o_ref[...] = acc_ref[...].astype(o_ref.dtype)


def _swiglu_kernel_resident(x_ref, w13_ref, w2t_ref, o_ref):
    # Weights-resident fast path: w13 = [W1.T | W3.T] (D, 2*DFF_p), w2t (DFF_p, D)
    # have constant index_maps -> DMA'd once, no re-streaming per M tile.
    x = x_ref[...].astype(w13_ref.dtype)
    h = jnp.dot(x, w13_ref[...], preferred_element_type=jnp.float32)  # (tm, 2*DFF_p)
    dff_p = w2t_ref.shape[0]
    h1 = h[:, :dff_p]
    h3 = h[:, dff_p:]
    g = (h1 * jax.nn.sigmoid(h1)) * h3
    o_ref[...] = jnp.dot(g.astype(w2t_ref.dtype), w2t_ref[...],
                         preferred_element_type=jnp.float32).astype(o_ref.dtype)


# ---------------------------------------------------------------------------
# One-time weight preparation (hoisted out of the per-call path)
# ---------------------------------------------------------------------------
def prepare_ffn_params(w1_w3, w2, *, compute_dtype=jnp.bfloat16, mode="auto", tn_ff=None):
    """w1_w3: [2*DFF, D], w2: [D, DFF] (PyTorch (out, inp) layout). Call ONCE."""
    two_dff, d = w1_w3.shape
    dff = two_dff // 2
    assert w2.shape == (d, dff)

    w_item = jnp.dtype(compute_dtype).itemsize
    vmem_cap, _ = _hw_info()
    budget = int(vmem_cap * 0.7)

    if mode == "auto":
        dff_p_res = _round_up(dff, 256)
        tm_res = 256
        resident_fp = (2 * 3 * d * dff_p_res * w_item      # w13 + w2 (2 pipeline bufs)
                       + 2 * tm_res * d * (4 + 4)          # x/out tiles (worst-case f32)
                       + tm_res * 3 * dff_p_res * 4)       # f32 h/g intermediates
        mode = "resident" if resident_fp <= budget else "tiled"

    # chunk(2, dim=-1) of (x @ W1_W3.T) == [x @ W1_W3[:dff].T, x @ W1_W3[dff:].T]
    w1t = w1_w3[:dff, :].T.astype(compute_dtype)   # (D, DFF)
    w3t = w1_w3[dff:, :].T.astype(compute_dtype)   # (D, DFF)
    w2t = w2.T.astype(compute_dtype)               # (DFF, D)

    if mode == "resident":
        dff_p = _round_up(dff, 256)
        pad = dff_p - dff
        if pad:
            w1t = jnp.pad(w1t, ((0, 0), (0, pad)))
            w3t = jnp.pad(w3t, ((0, 0), (0, pad)))
            w2t = jnp.pad(w2t, ((0, pad), (0, 0)))
        w13 = jnp.concatenate([w1t, w3t], axis=1)  # (D, 2*DFF_p) = [W1.T | W3.T]
        tn_ff = dff_p
    else:
        if tn_ff is None:
            # Prefer 512-wide DFF tiles when the (double-buffered) weight tiles fit.
            tn_ff = 512 if 6 * d * 512 * w_item <= budget // 3 else 256
        tn_ff = min(tn_ff, _round_up(dff, 256))
        tn_ff = max(256, (tn_ff // 256) * 256)
        dff_p = _round_up(dff, tn_ff)
        pad = dff_p - dff
        if pad:
            w1t = jnp.pad(w1t, ((0, 0), (0, pad)))
            w3t = jnp.pad(w3t, ((0, 0), (0, pad)))
            w2t = jnp.pad(w2t, ((0, pad), (0, 0)))
        nt = dff_p // tn_ff
        # Tile-interleave so DFF tile j of the fused operand is [W1.T tile j | W3.T tile j].
        w13 = jnp.concatenate(
            [w1t.reshape(d, nt, tn_ff), w3t.reshape(d, nt, tn_ff)], axis=2
        ).reshape(d, nt * 2 * tn_ff)

    return {"mode": mode, "w13": w13, "w2t": w2t,
            "d": d, "dff": dff, "dff_p": dff_p, "tn_ff": tn_ff}


# ---------------------------------------------------------------------------
# Forward wrapper
# ---------------------------------------------------------------------------
def _choose_tm(M, kind, vmem_cap, base_tm=None):
    if base_tm is None:
        if "v5 lite" in kind or "v5e" in kind or "v5lite" in kind:
            base_tm = 256          # roofline crossover ~240 flops/byte
        elif "v7" in kind:
            base_tm = 512          # 64 MiB VMEM per TC
        elif "v6" in kind:
            base_tm = 1024         # 128 MiB VMEM, ~640 flops/byte crossover
        else:
            base_tm = 1024 if vmem_cap >= (96 << 20) else 512
    tm = min(base_tm, _round_up(M, 128))
    if "v7" in kind:
        # 2 TensorCores per chip: ensure >=2 M tiles for small-M (decode-like) shapes.
        mp = _round_up(M, 128)
        if mp // tm < 2 and mp >= 256:
            tm = _round_up(mp // 2, 128)
    return max(128, (tm // 128) * 128)


def pos_wise_ffn_swiglu(x, params, *, tm=None):
    """x: [batch, seq, D] -> [batch, seq, D] in x.dtype. params from prepare_ffn_params."""
    mode = params["mode"]
    w13, w2t = params["w13"], params["w2t"]
    D, dff_p, tn_ff = params["d"], params["dff_p"], params["tn_ff"]
    B, S, Dx = x.shape
    assert Dx == D

    compute_dtype = w13.dtype
    out_dtype = x.dtype
    x_item = jnp.dtype(out_dtype).itemsize
    w_item = jnp.dtype(compute_dtype).itemsize

    vmem_cap, kind = _hw_info()
    budget = int(vmem_cap * 0.7)

    M = B * S
    base_tm = 256 if (tm is None and mode == "resident") else tm
    tm = _choose_tm(M, kind, vmem_cap, base_tm)

    # VMEM footprint model: double-buffered x/out tiles, double-buffered weight tiles,
    # f32 accumulator (tiled path) and f32 h/g intermediates.
    if mode == "tiled":
        def footprint(t):
            return (2 * t * D * (x_item + x_item)
                    + t * D * 4
                    + 2 * 3 * tn_ff * D * w_item
                    + t * 3 * tn_ff * 4)
    else:
        def footprint(t):
            return (2 * t * D * (x_item + x_item)
                    + 2 * 3 * D * dff_p * w_item
                    + t * 3 * dff_p * 4)

    while tm > 128 and footprint(tm) > budget:
        tm -= 128

    Mp = _round_up(M, tm)
    x2 = x.reshape(M, D)                       # no dtype cast here; kernel casts on-load
    if Mp != M:
        x2 = jnp.pad(x2, ((0, Mp - M), (0, 0)))  # zero rows are exact for SwiGLU

    vmem_limit = int(min(vmem_cap * 0.92,
                         max(32 << 20, footprint(tm) * 1.3 + (8 << 20))))

    num_m_tiles = Mp // tm
    w_streams = num_m_tiles if mode == "tiled" else 1
    cost = pl.CostEstimate(
        flops=6 * Mp * D * dff_p,                       # two gate matmuls + down proj
        transcendentals=2 * Mp * dff_p,                 # sigmoid ~= exp + reciprocal
        bytes_accessed=(Mp * D * x_item
                        + w_streams * 3 * D * dff_p * w_item
                        + Mp * D * x_item),
    )

    if mode == "tiled":
        grid = (num_m_tiles, dff_p // tn_ff)
        out2 = pl.pallas_call(
            _swiglu_kernel_tiled,
            out_shape=jax.ShapeDtypeStruct((Mp, D), out_dtype),
            grid_spec=pltpu.PrefetchScalarGridSpec(
                num_scalar_prefetch=0,
                grid=grid,
                in_specs=[
                    pl.BlockSpec((tm, D), lambda i, j: (i, 0)),          # x (reused over DFF)
                    pl.BlockSpec((D, 2 * tn_ff), lambda i, j: (0, j)),   # fused [W1.T|W3.T] tile
                    pl.BlockSpec((tn_ff, D), lambda i, j: (j, 0)),       # W2.T tile
                ],
                out_specs=pl.BlockSpec((tm, D), lambda i, j: (i, 0)),
                scratch_shapes=[pltpu.VMEM((tm, D), jnp.float32)],
            ),
            compiler_params=pltpu.CompilerParams(
                dimension_semantics=("parallel", "arbitrary"),
                vmem_limit_bytes=vmem_limit,
            ),
            cost_estimate=cost,
        )(x2, w13, w2t)
    else:
        grid = (num_m_tiles,)
        out2 = pl.pallas_call(
            _swiglu_kernel_resident,
            out_shape=jax.ShapeDtypeStruct((Mp, D), out_dtype),
            grid_spec=pltpu.PrefetchScalarGridSpec(
                num_scalar_prefetch=0,
                grid=grid,
                in_specs=[
                    pl.BlockSpec((tm, D), lambda i: (i, 0)),
                    pl.BlockSpec((D, 2 * dff_p), lambda i: (0, 0)),      # resident weights
                    pl.BlockSpec((dff_p, D), lambda i: (0, 0)),          # resident weights
                ],
                out_specs=pl.BlockSpec((tm, D), lambda i: (i, 0)),
            ),
            compiler_params=pltpu.CompilerParams(
                dimension_semantics=("parallel",),
                vmem_limit_bytes=vmem_limit,
            ),
            cost_estimate=cost,
        )(x2, w13, w2t)

    if Mp != M:
        out2 = out2[:M]
    return out2.reshape(B, S, D)


# ---------------------------------------------------------------------------
# Init + reference (match the PyTorch module)
# ---------------------------------------------------------------------------
def _trunc_normal(key, shape, std):
    # matches nn.init.trunc_normal_(mean=0, std=std, a=-3*std, b=3*std)
    return jax.random.truncated_normal(key, -3.0, 3.0, shape, jnp.float32) * std


def init_pos_wise_ffn_params(key, embedding_dim):
    value = 8 * embedding_dim / 3
    dff = round(value / 64) * 64
    k1, k2 = jax.random.split(key)
    std1 = math.sqrt(2.0 / (embedding_dim + 2 * dff))
    std2 = math.sqrt(2.0 / (dff + embedding_dim))
    w1_w3 = _trunc_normal(k1, (2 * dff, embedding_dim), std1)  # (out, inp)
    w2 = _trunc_normal(k2, (embedding_dim, dff), std2)         # (out, inp)
    return w1_w3, w2


def _reference(x, w1_w3, w2):
    h = jnp.einsum("bsd,fd->bsf", x, w1_w3)
    dff = w1_w3.shape[0] // 2
    h1, h3 = h[..., :dff], h[..., dff:]
    g = (h1 * jax.nn.sigmoid(h1)) * h3
    return jnp.einsum("bsf,df->bsd", g, w2)


if __name__ == "__main__":
    key = jax.random.PRNGKey(0)
    kx, kp = jax.random.split(key)

    batch, seq, embedding_dim = 2, 64, 128   # -> dff = 320
    x = jax.random.normal(kx, (batch, seq, embedding_dim), jnp.float32)
    w1_w3, w2 = init_pos_wise_ffn_params(kp, embedding_dim)
    ref = _reference(x, w1_w3, w2)

    # 1) f32 compute, auto mode (weights-resident fast path): tight tolerance.
    p = prepare_ffn_params(w1_w3, w2, compute_dtype=jnp.float32)
    out = jax.block_until_ready(pos_wise_ffn_swiglu(x, p))
    assert out.shape == (batch, seq, embedding_dim)
    assert jnp.allclose(out, ref, atol=1e-4, rtol=1e-4)

    # 2) f32 compute, forced DFF-tiled path (exercises the reduction grid + accumulator).
    p = prepare_ffn_params(w1_w3, w2, compute_dtype=jnp.float32, mode="tiled", tn_ff=256)
    out = jax.block_until_ready(pos_wise_ffn_swiglu(x, p))
    assert jnp.allclose(out, ref, atol=1e-4, rtol=1e-4)

    # 3) bf16 MXU inputs (f32 accumulation), resident path.
    p = prepare_ffn_params(w1_w3, w2, compute_dtype=jnp.bfloat16)
    out = jax.block_until_ready(pos_wise_ffn_swiglu(x, p))
    assert jnp.allclose(out.astype(jnp.float32), ref, atol=5e-2, rtol=5e-2)

    # 4) bf16 MXU inputs, forced DFF-tiled path.
    p = prepare_ffn_params(w1_w3, w2, compute_dtype=jnp.bfloat16, mode="tiled", tn_ff=256)
    out = jax.block_until_ready(pos_wise_ffn_swiglu(x, p))
    assert jnp.allclose(out.astype(jnp.float32), ref, atol=5e-2, rtol=5e-2)

    print("KERNEL_OK")
</pallas_src>

<mosaic_0001>
module attributes {stable_mosaic.version = 11 : i64} {
  func.func @_swiglu_kernel_resident(%arg0: i32, %arg1: memref<128x128xf32, #tpu.memory_space<vmem>>, %arg2: memref<128x1024xf32, #tpu.memory_space<vmem>>, %arg3: memref<512x128xf32, #tpu.memory_space<vmem>>, %arg4: memref<128x128xf32, #tpu.memory_space<vmem>>) attributes {dimension_semantics = [#tpu.dimension_semantics<parallel>], iteration_bounds = array<i64: 1>, scalar_prefetch = 0 : i64, scratch_operands = 0 : i64, tpu.core_type = #tpu.core_type<tc>, window_params = [{transform_indices = @transform_0, window_bounds = array<i64: 128, 128>}, {pipeline_mode = #tpu.pipeline_mode<synchronous>, transform_indices = @transform_1, window_bounds = array<i64: 128, 1024>}, {pipeline_mode = #tpu.pipeline_mode<synchronous>, transform_indices = @transform_2, window_bounds = array<i64: 512, 128>}, {transform_indices = @transform_3, window_bounds = array<i64: 128, 128>}]} {
    %c0 = arith.constant 0 : index
    %c0_0 = arith.constant 0 : index
    %0 = vector.load %arg1[%c0, %c0_0] : memref<128x128xf32, #tpu.memory_space<vmem>>, vector<128x128xf32>
    %c0_1 = arith.constant 0 : index
    %c0_2 = arith.constant 0 : index
    %1 = vector.load %arg2[%c0_1, %c0_2] : memref<128x1024xf32, #tpu.memory_space<vmem>>, vector<128x1024xf32>
    %cst = arith.constant dense<0.000000e+00> : vector<128x1024xf32>
    %2 = tpu.matmul %0, %1, %cst {dimension_numbers = #tpu.dot_dimension_numbers<[1], [0], [0], [1], [0, 0, 1, 1], [], []>} : vector<128x128xf32>, vector<128x1024xf32>, vector<128x1024xf32> -> vector<128x1024xf32>
    %3 = vector.extract_strided_slice %2 {offsets = [0, 0], sizes = [128, 512], strides = [1, 1]} : vector<128x1024xf32> to vector<128x512xf32>
    %4 = vector.extract_strided_slice %2 {offsets = [0, 512], sizes = [128, 512], strides = [1, 1]} : vector<128x1024xf32> to vector<128x512xf32>
    %5 = arith.negf %3 : vector<128x512xf32>
    %6 = math.exp %5 : vector<128x512xf32>
    %cst_3 = arith.constant 1.000000e+00 : f32
    %7 = vector.broadcast %cst_3 : f32 to vector<128x512xf32>
    %8 = arith.addf %7, %6 : vector<128x512xf32>
    %9 = arith.divf %7, %8 : vector<128x512xf32>
    %10 = arith.mulf %3, %9 : vector<128x512xf32>
    %11 = arith.mulf %10, %4 : vector<128x512xf32>
    %c0_4 = arith.constant 0 : index
    %c0_5 = arith.constant 0 : index
    %12 = vector.load %arg3[%c0_4, %c0_5] : memref<512x128xf32, #tpu.memory_space<vmem>>, vector<512x128xf32>
    %cst_6 = arith.constant dense<0.000000e+00> : vector<128x128xf32>
    %13 = tpu.matmul %11, %12, %cst_6 {dimension_numbers = #tpu.dot_dimension_numbers<[1], [0], [0], [1], [0, 0, 1, 1], [], []>} : vector<128x512xf32>, vector<512x128xf32>, vector<128x128xf32> -> vector<128x128xf32>
    %c0_7 = arith.constant 0 : index
    %c0_8 = arith.constant 0 : index
    %14 = vector.load %arg4[%c0_7, %c0_8] : memref<128x128xf32, #tpu.memory_space<vmem>>, vector<128x128xf32>
    tpu.vector_store %arg4[%c0_7, %c0_8], %13 {strides = array<i32>} : memref<128x128xf32, #tpu.memory_space<vmem>>, vector<128x128xf32>,
    return
  }
  func.func @transform_0(%arg0: i32) -> (i32, i32) {
    %c0_i32 = arith.constant 0 : i32
    %c0_i32_0 = arith.constant 0 : i32
    return %arg0, %c0_i32 : i32, i32
  }
  func.func @transform_1(%arg0: i32) -> (i32, i32) {
    %c0_i32 = arith.constant 0 : i32
    %c0_i32_0 = arith.constant 0 : i32
    %c0_i32_1 = arith.constant 0 : i32
    return %c0_i32, %c0_i32_0 : i32, i32
  }
  func.func @transform_2(%arg0: i32) -> (i32, i32) {
    %c0_i32 = arith.constant 0 : i32
    %c0_i32_0 = arith.constant 0 : i32
    %c0_i32_1 = arith.constant 0 : i32
    return %c0_i32, %c0_i32_0 : i32, i32
  }
  func.func @transform_3(%arg0: i32) -> (i32, i32) {
    %c0_i32 = arith.constant 0 : i32
    %c0_i32_0 = arith.constant 0 : i32
    return %arg0, %c0_i32 : i32, i32
  }
}

</mosaic_0001>

<bundles_post_ra>
// kernel: tpu_custom_call.1
= control target key start
LH: loop header
LB: loop body
LE: loop exit
PB: predicated region body
PF: predicated region fallthrough
CT: control target
= control target key end

     0   :  { %8 = vsyncpa [#allocation3], 0  ;;  %s2893_s0 = inlined_call_operand.hbm [shape: f32[128,128], index: 0, kind: input, shape index: {}]   ;;  %s2894_s1 = inlined_call_operand.hbm [shape: f32[128,1024], index: 1, kind: input, shape index: {}]   ;;  %s2895_s2 = inlined_call_operand.hbm [shape: f32[512,128], index: 2, kind: input, shape index: {}]   ;;  %s2896_s3 = inlined_call_operand.hbm [shape: f32[128,128], index: 3, kind: output, shape index: {}]  }
   0x1   :  { %9 = vsyncpa [#allocation6], 0 }
   0x2   :  { %10 = vsyncpa [#allocation4], 0  ;;  %s2319_s12 = smov [#allocation5]  }
   0x3   :  { %s28_s13 = sshll.u32 %s2319_s12, 4  ;;  %s29_s13 = int_to_ptr.vmem [resolvable:$true] %s28_s13 }
   0x4   :  { %s2241_s14 = scalar_lea.vmem %s29_s13, 16384  ;;  %p2246_p1 = scmp.lt.s32.totalorder %s29_s13, %s29_s13 }
   0x5   :  { %p2242_p0 = scmp.ne.s32.totalorder %s29_s13, %s2241_s14  ;;  %p2247_p2 = scmp.lt.s32.totalorder %s2241_s14, %s2241_s14 }
   0x7   :  { %p2248_p3 = por %p2247_p2, %p2246_p1 }
   0x9   :  { %p2249_p4 = pnand %p2248_p3, %p2242_p0 }
   0xb   :  { %2252 = shalt.err (!%p2249_p4)
}
   0xc   :  { %s2320_s15 = smov 1024   ;;  %s2321_s16 = smov 64  }
   0xd   :  { %34 = dma.hbm_to_vmem [thread:$0]  %s2894_s1, 16384, %s29_s13, [#allocation6], %s2320_s15, %s2320_s15, %s2321_s16  }
   0xe   :  { %s2322_s19 = smov [#allocation2]  }
   0xf   :  { %s16_s20 = sshll.u32 %s2322_s19, 4  ;;  %s17_s20 = int_to_ptr.vmem [resolvable:$true] %s16_s20 }
  0x10   :  { %s2261_s21 = scalar_lea.vmem %s17_s20, 2048  ;;  %p2266_p6 = scmp.lt.s32.totalorder %s17_s20, %s17_s20 }
  0x11   :  { %p2262_p5 = scmp.ne.s32.totalorder %s17_s20, %s2261_s21  ;;  %p2267_p7 = scmp.lt.s32.totalorder %s2261_s21, %s2261_s21 }
  0x13   :  { %p2268_p8 = por %p2267_p7, %p2266_p6 }
  0x15   :  { %p2269_p9 = pnand %p2268_p8, %p2262_p5 }
  0x17   :  { %2272 = shalt.err (!%p2269_p9)
}
  0x18   :  { %s2323_s22 = smov 128   ;;  %s2324_s23 = smov 8  }
  0x19   :  { %22 = dma.hbm_to_vmem [thread:$0]  %s2893_s0, 2048, %s17_s20, [#allocation3], %s2323_s22, %s2323_s22, %s2324_s23  }
  0x1a   :  { %s2325_s1 = smov [#allocation7]  }
  0x1b   :  { %s40_s26 = sshll.u32 %s2325_s1, 4  ;;  %s41_s26 = int_to_ptr.vmem [resolvable:$true] %s40_s26 }
  0x1c   :  { %s2281_s27 = scalar_lea.vmem %s41_s26, 8192  ;;  %p2286_p11 = scmp.lt.s32.totalorder %s41_s26, %s41_s26 }
  0x1d   :  { %p2282_p10 = scmp.ne.s32.totalorder %s41_s26, %s2281_s27  ;;  %p2287_p12 = scmp.lt.s32.totalorder %s2281_s27, %s2281_s27 }
  0x1f   :  { %p2288_p13 = por %p2287_p12, %p2286_p11 }
  0x21   :  { %p2289_p0 = pnand %p2288_p13, %p2282_p10 }
  0x23   :  { %2292 = shalt.err (!%p2289_p0)
}
  0x24   :  { %46 = dma.hbm_to_vmem [thread:$0]  %s2895_s2, 8192, %s41_s26, [#allocation6], %s2323_s22, %s2323_s22, %s2324_s23  }
  0x25   :  { %2313 = dma.done.wait [#allocation3], 2048  }
  0x26   :  { %2314 = vsyncadd [#allocation3], 4294965248 }
  0x27   :  { %2315 = dma.done.wait [#allocation6], 24576  }
  0x28   :  { %2316 = vsyncadd [#allocation6], 4294942720  ;;  %v2326_v0 = vmov 0.0   ;;  %v193_v1 = vld [vmem:[#allocation5 + $0x3c8] sm:$0xff]  ;;  %v195_v2 = vld [vmem:[#allocation5 + $0x3d8] sm:$0xff]  ;;  %s2327_s0 = smov [#allocation8]  }
  0x29   :  { %264 = vmatprep.mubr.f32.mxu0 %v2326_v0  ;;  %425 = vmatprep.mubr.f32.mxu1 %v2326_v0  ;;  %v192_v3 = vld [vmem:[#allocation5 + $0x3c0] sm:$0xff]  ;;  %v194_v4 = vld [vmem:[#allocation5 + $0x3d0] sm:$0xff]  ;;  %v185_v5 = vld [vmem:[#allocation5 + $0x388] sm:$0xff]  ;;  %s1731_s2 = sshll.u32 %s2327_s0, 4  ;;  %s1732_s2 = int_to_ptr.vmem [resolvable:$true] %s1731_s2 }
  0x2a   :  { %200 = vmatprep.subr.mxu0 %v193_v1  ;;  %361 = vmatprep.subr.mxu1 %v195_v2  ;;  %v187_v6 = vld [vmem:[#allocation5 + $0x398] sm:$0xff]  ;;  %v184_v7 = vld [vmem:[#allocation5 + $0x380] sm:$0xff]  ;;  %v186_v8 = vld [vmem:[#allocation5 + $0x390] sm:$0xff]  ;;  %s2293_s30 = scalar_lea.vmem %s1732_s2, 2048  ;;  %p2298_p2 = scmp.lt.s32.totalorder %s1732_s2, %s1732_s2 }
  0x2b   :  { %201 = vmatpush1.msra.mxu0 %v192_v3  ;;  %362 = vmatpush1.msra.mxu1 %v194_v4  ;;  %v177_v9 = vld [vmem:[#allocation5 + $0x348] sm:$0xff]  ;;  %v179_v10 = vld [vmem:[#allocation5 + $0x358] sm:$0xff]  ;;  %v176_v11 = vld [vmem:[#allocation5 + $0x340] sm:$0xff]  ;;  %p2294_p1 = scmp.ne.s32.totalorder %s1732_s2, %s2293_s30  ;;  %p2299_p3 = scmp.lt.s32.totalorder %s2293_s30, %s2293_s30 }
  0x2c   :  { %202 = vmatprep.subr.mxu0 %v185_v5  ;;  %363 = vmatprep.subr.mxu1 %v187_v6  ;;  %v178_v12 = vld [vmem:[#allocation5 + $0x350] sm:$0xff]  ;;  %v169_v13 = vld [vmem:[#allocation5 + $0x308] sm:$0xff]  ;;  %v171_v14 = vld [vmem:[#allocation5 + $0x318] sm:$0xff] }
  0x2d   :  { %203 = vmatpush1.msra.mxu0 %v184_v7  ;;  %364 = vmatpush1.msra.mxu1 %v186_v8  ;;  %v168_v15 = vld [vmem:[#allocation5 + $0x300] sm:$0xff]  ;;  %v170_v16 = vld [vmem:[#allocation5 + $0x310] sm:$0xff]  ;;  %v161_v17 = vld [vmem:[#allocation5 + $0x2c8] sm:$0xff]  ;;  %p2300_p4 = por %p2299_p3, %p2298_p2 }
  0x2e   :  { %204 = vmatprep.subr.mxu0 %v177_v9  ;;  %365 = vmatprep.subr.mxu1 %v179_v10  ;;  %v163_v18 = vld [vmem:[#allocation5 + $0x2d8] sm:$0xff]  ;;  %v160_v19 = vld [vmem:[#allocation5 + $0x2c0] sm:$0xff]  ;;  %v162_v20 = vld [vmem:[#allocation5 + $0x2d0] sm:$0xff] }
  0x2f   :  { %205 = vmatpush1.msra.mxu0 %v176_v11  ;;  %366 = vmatpush1.msra.mxu1 %v178_v12  ;;  %v153_v21 = vld [vmem:[#allocation5 + $0x288] sm:$0xff]  ;;  %v155_v22 = vld [vmem:[#allocation5 + $0x298] sm:$0xff]  ;;  %v152_v23 = vld [vmem:[#allocation5 + $0x280] sm:$0xff]  ;;  %p2301_p5 = pnand %p2300_p4, %p2294_p1 }
  0x30   :  { %206 = vmatprep.subr.mxu0 %v169_v13  ;;  %367 = vmatprep.subr.mxu1 %v171_v14  ;;  %v154_v24 = vld [vmem:[#allocation5 + $0x290] sm:$0xff]  ;;  %v145_v25 = vld [vmem:[#allocation5 + $0x248] sm:$0xff]  ;;  %v147_v26 = vld [vmem:[#allocation5 + $0x258] sm:$0xff] }
  0x31   :  { %207 = vmatpush1.msra.mxu0 %v168_v15  ;;  %368 = vmatpush1.msra.mxu1 %v170_v16  ;;  %v144_v27 = vld [vmem:[#allocation5 + $0x240] sm:$0xff]  ;;  %v146_v28 = vld [vmem:[#allocation5 + $0x250] sm:$0xff]  ;;  %v137_v29 = vld [vmem:[#allocation5 + $0x208] sm:$0xff] }
  0x32   :  { %208 = vmatprep.subr.mxu0 %v161_v17  ;;  %369 = vmatprep.subr.mxu1 %v163_v18  ;;  %v139_v30 = vld [vmem:[#allocation5 + $0x218] sm:$0xff]  ;;  %v136_v31 = vld [vmem:[#allocation5 + $0x200] sm:$0xff]  ;;  %v138_v32 = vld [vmem:[#allocation5 + $0x210] sm:$0xff] }
  0x33   :  { %209 = vmatpush1.msra.mxu0 %v160_v19  ;;  %370 = vmatpush1.msra.mxu1 %v162_v20  ;;  %v129_v33 = vld [vmem:[#allocation5 + $0x1c8] sm:$0xff]  ;;  %v131_v34 = vld [vmem:[#allocation5 + $0x1d8] sm:$0xff]  ;;  %v128_v35 = vld [vmem:[#allocation5 + $0x1c0] sm:$0xff] }
  0x34   :  { %210 = vmatprep.subr.mxu0 %v153_v21  ;;  %371 = vmatprep.subr.mxu1 %v155_v22  ;;  %v130_v36 = vld [vmem:[#allocation5 + $0x1d0] sm:$0xff]  ;;  %v121_v37 = vld [vmem:[#allocation5 + $0x188] sm:$0xff]  ;;  %v123_v38 = vld [vmem:[#allocation5 + $0x198] sm:$0xff] }
  0x35   :  { %211 = vmatpush1.msra.mxu0 %v152_v23  ;;  %372 = vmatpush1.msra.mxu1 %v154_v24  ;;  %v120_v39 = vld [vmem:[#allocation5 + $0x180] sm:$0xff]  ;;  %v122_v40 = vld [vmem:[#allocation5 + $0x190] sm:$0xff]  ;;  %v113_v41 = vld [vmem:[#allocation5 + $0x148] sm:$0xff] }
  0x36   :  { %212 = vmatprep.subr.mxu0 %v145_v25  ;;  %373 = vmatprep.subr.mxu1 %v147_v26  ;;  %v115_v42 = vld [vmem:[#allocation5 + $0x158] sm:$0xff]  ;;  %v112_v43 = vld [vmem:[#allocation5 + $0x140] sm:$0xff]  ;;  %v114_v44 = vld [vmem:[#allocation5 + $0x150] sm:$0xff] }
  0x37   :  { %213 = vmatpush1.msra.mxu0 %v144_v27  ;;  %374 = vmatpush1.msra.mxu1 %v146_v28  ;;  %v105_v45 = vld [vmem:[#allocation5 + $0x108] sm:$0xff]  ;;  %v107_v46 = vld [vmem:[#allocation5 + $0x118] sm:$0xff]  ;;  %v104_v47 = vld [vmem:[#allocation5 + $0x100] sm:$0xff] }
  0x38   :  { %214 = vmatprep.subr.mxu0 %v137_v29  ;;  %375 = vmatprep.subr.mxu1 %v139_v30  ;;  %v106_v48 = vld [vmem:[#allocation5 + $0x110] sm:$0xff]  ;;  %v97_v49 = vld [vmem:[#allocation5 + $0xc8] sm:$0xff]  ;;  %v99_v50 = vld [vmem:[#allocation5 + $0xd8] sm:$0xff] }
  0x39   :  { %215 = vmatpush1.msra.mxu0 %v136_v31  ;;  %376 = vmatpush1.msra.mxu1 %v138_v32  ;;  %v96_v51 = vld [vmem:[#allocation5 + $0xc0] sm:$0xff]  ;;  %v98_v52 = vld [vmem:[#allocation5 + $0xd0] sm:$0xff]  ;;  %v89_v53 = vld [vmem:[#allocation5 + $0x88] sm:$0xff] }
  0x3a   :  { %216 = vmatprep.subr.mxu0 %v129_v33  ;;  %377 = vmatprep.subr.mxu1 %v131_v34  ;;  %v91_v54 = vld [vmem:[#allocation5 + $0x98] sm:$0xff]  ;;  %v88_v55 = vld [vmem:[#allocation5 + $0x80] sm:$0xff]  ;;  %v90_v56 = vld [vmem:[#allocation5 + $0x90] sm:$0xff] }
  0x3b   :  { %217 = vmatpush1.msra.mxu0 %v128_v35  ;;  %378 = vmatpush1.msra.mxu1 %v130_v36  ;;  %v81_v57 = vld [vmem:[#allocation5 + $0x48] sm:$0xff]  ;;  %v83_v58 = vld [vmem:[#allocation5 + $0x58] sm:$0xff]  ;;  %v80_v59 = vld [vmem:[#allocation5 + $0x40] sm:$0xff] }
  0x3c   :  { %218 = vmatprep.subr.mxu0 %v121_v37  ;;  %379 = vmatprep.subr.mxu1 %v123_v38  ;;  %v82_v60 = vld [vmem:[#allocation5 + $0x50] sm:$0xff]  ;;  %v73_v61 = vld [vmem:[#allocation5 + $0x8] sm:$0xff]  ;;  %v75_v62 = vld [vmem:[#allocation5 + $0x18] sm:$0xff] }
  0x3d   :  { %219 = vmatpush1.msra.mxu0 %v120_v39  ;;  %380 = vmatpush1.msra.mxu1 %v122_v40  ;;  %v72_v63 = vld [vmem:[#allocation5] sm:$0xff]  ;;  %v74_v1 = vld [vmem:[#allocation5 + $0x10] sm:$0xff]  ;;  %v197_v3 = vld [vmem:[#allocation5 + $0x3e8] sm:$0xff] }
  0x3e   :  { %220 = vmatprep.subr.mxu0 %v113_v41  ;;  %381 = vmatprep.subr.mxu1 %v115_v42  ;;  %v2365_v2 = vld [vmem:[#allocation2] sm:$0xff]  ;;  %v199_v4 = vld [vmem:[#allocation5 + $0x3f8] sm:$0xff]  ;;  %v198_v6 = vld [vmem:[#allocation5 + $0x3f0] sm:$0xff] }
  0x3f   :  { %221 = vmatpush1.msra.mxu0 %v112_v43  ;;  %382 = vmatpush1.msra.mxu1 %v114_v44  ;;  %v196_v5 = vld [vmem:[#allocation5 + $0x3e0] sm:$0xff]  ;;  %v2369_v7 = vld [vmem:[#allocation2 + $0x8] sm:$0xff]  ;;  %v191_v9 = vld [vmem:[#allocation5 + $0x3b8] sm:$0xff] }
  0x40   :  { %222 = vmatprep.subr.mxu0 %v105_v45  ;;  %383 = vmatprep.subr.mxu1 %v107_v46  ;;  %v189_v8 = vld [vmem:[#allocation5 + $0x3a8] sm:$0xff]  ;;  %v188_v10 = vld [vmem:[#allocation5 + $0x3a0] sm:$0xff]  ;;  %v190_v11 = vld [vmem:[#allocation5 + $0x3b0] sm:$0xff] }
  0x41   :  { %223 = vmatpush1.msra.mxu0 %v104_v47  ;;  %384 = vmatpush1.msra.mxu1 %v106_v48  ;;  %v2375_v12 = vld [vmem:[#allocation2 + $0x10] sm:$0xff]  ;;  %v181_v13 = vld [vmem:[#allocation5 + $0x368] sm:$0xff]  ;;  %v183_v14 = vld [vmem:[#allocation5 + $0x378] sm:$0xff] }
  0x42   :  { %224 = vmatprep.subr.mxu0 %v97_v49  ;;  %385 = vmatprep.subr.mxu1 %v99_v50  ;;  %v180_v15 = vld [vmem:[#allocation5 + $0x360] sm:$0xff]  ;;  %v182_v16 = vld [vmem:[#allocation5 + $0x370] sm:$0xff]  ;;  %v2381_v17 = vld [vmem:[#allocation2 + $0x18] sm:$0xff] }
  0x43   :  { %225 = vmatpush1.msra.mxu0 %v96_v51  ;;  %386 = vmatpush1.msra.mxu1 %v98_v52  ;;  %v173_v18 = vld [vmem:[#allocation5 + $0x328] sm:$0xff]  ;;  %v175_v19 = vld [vmem:[#allocation5 + $0x338] sm:$0xff]  ;;  %v172_v20 = vld [vmem:[#allocation5 + $0x320] sm:$0xff] }
  0x44   :  { %226 = vmatprep.subr.mxu0 %v89_v53  ;;  %387 = vmatprep.subr.mxu1 %v91_v54  ;;  %v174_v21 = vld [vmem:[#allocation5 + $0x330] sm:$0xff]  ;;  %v2387_v22 = vld [vmem:[#allocation2 + $0x20] sm:$0xff]  ;;  %v165_v23 = vld [vmem:[#allocation5 + $0x2e8] sm:$0xff] }
  0x45   :  { %227 = vmatpush1.msra.mxu0 %v88_v55  ;;  %388 = vmatpush1.msra.mxu1 %v90_v56  ;;  %v167_v24 = vld [vmem:[#allocation5 + $0x2f8] sm:$0xff]  ;;  %v164_v25 = vld [vmem:[#allocation5 + $0x2e0] sm:$0xff]  ;;  %v166_v26 = vld [vmem:[#allocation5 + $0x2f0] sm:$0xff] }
  0x46   :  { %228 = vmatprep.subr.mxu0 %v81_v57  ;;  %389 = vmatprep.subr.mxu1 %v83_v58  ;;  %v2393_v27 = vld [vmem:[#allocation2 + $0x28] sm:$0xff]  ;;  %v159_v29 = vld [vmem:[#allocation5 + $0x2b8] sm:$0xff]  ;;  %v156_v30 = vld [vmem:[#allocation5 + $0x2a0] sm:$0xff] }
  0x47   :  { %229 = vmatpush1.msra.mxu0 %v80_v59  ;;  %390 = vmatpush1.msra.mxu1 %v82_v60  ;;  %v157_v28 = vld [vmem:[#allocation5 + $0x2a8] sm:$0xff]  ;;  %v158_v31 = vld [vmem:[#allocation5 + $0x2b0] sm:$0xff]  ;;  %v151_v34 = vld [vmem:[#allocation5 + $0x278] sm:$0xff] }
  0x48   :  { %230 = vmatprep.subr.mxu0 %v73_v61  ;;  %391 = vmatprep.subr.mxu1 %v75_v62  ;;  %v2399_v32 = vld [vmem:[#allocation2 + $0x30] sm:$0xff]  ;;  %v149_v33 = vld [vmem:[#allocation5 + $0x268] sm:$0xff]  ;;  %v148_v35 = vld [vmem:[#allocation5 + $0x260] sm:$0xff] }
  0x49   :  { %231 = vmatpush1.msra.mxu0 %v72_v63  ;;  %392 = vmatpush1.msra.mxu1 %v74_v1  ;;  %v150_v36 = vld [vmem:[#allocation5 + $0x270] sm:$0xff]  ;;  %v2405_v37 = vld [vmem:[#allocation2 + $0x38] sm:$0xff]  ;;  %v141_v38 = vld [vmem:[#allocation5 + $0x228] sm:$0xff] }
  0x4a   :  { %265 = vmatmul.mubr.f32.vlgmr.msra.gmra.mxu0 %v2365_v2  ;;  %426 = vmatmul.mubr.f32.vlgmr.msra.gmra.mxu1 %v2365_v2  ;;  %v143_v39 = vld [vmem:[#allocation5 + $0x238] sm:$0xff]  ;;  %v140_v40 = vld [vmem:[#allocation5 + $0x220] sm:$0xff]  ;;  %v142_v41 = vld [vmem:[#allocation5 + $0x230] sm:$0xff] }
  0x4b   :  { %522 = vmatprep.subr.mxu0 %v197_v3  ;;  %683 = vmatprep.subr.mxu1 %v199_v4  ;;  %v2411_v42 = vld [vmem:[#allocation2 + $0x40] sm:$0xff]  ;;  %v133_v43 = vld [vmem:[#allocation5 + $0x1e8] sm:$0xff]  ;;  %v135_v44 = vld [vmem:[#allocation5 + $0x1f8] sm:$0xff] }
  0x4c   :  { %523 = vmatpush1.msra.mxu0 %v196_v5  ;;  %684 = vmatpush1.msra.mxu1 %v198_v6  ;;  %v132_v45 = vld [vmem:[#allocation5 + $0x1e0] sm:$0xff]  ;;  %v134_v46 = vld [vmem:[#allocation5 + $0x1f0] sm:$0xff]  ;;  %v2417_v47 = vld [vmem:[#allocation2 + $0x48] sm:$0xff] }
  0x4d   :  { %270 = vmatprep.mubr.f32.mxu0 %v2326_v0  ;;  %431 = vmatprep.mubr.f32.mxu1 %v2326_v0  ;;  %v125_v48 = vld [vmem:[#allocation5 + $0x1a8] sm:$0xff]  ;;  %v127_v49 = vld [vmem:[#allocation5 + $0x1b8] sm:$0xff]  ;;  %v124_v50 = vld [vmem:[#allocation5 + $0x1a0] sm:$0xff] }
  0x4e   :  { %271 = vmatmul.mubr.f32.gmra.mxu0 %v2369_v7  ;;  %432 = vmatmul.mubr.f32.gmra.mxu1 %v2369_v7  ;;  %v126_v51 = vld [vmem:[#allocation5 + $0x1b0] sm:$0xff]  ;;  %v117_v53 = vld [vmem:[#allocation5 + $0x168] sm:$0xff]  ;;  %v119_v54 = vld [vmem:[#allocation5 + $0x178] sm:$0xff] }
  0x4f   :  { %524 = vmatprep.subr.mxu0 %v189_v8  ;;  %685 = vmatprep.subr.mxu1 %v191_v9  ;;  %v2423_v52 = vld [vmem:[#allocation2 + $0x50] sm:$0xff]  ;;  %v116_v55 = vld [vmem:[#allocation5 + $0x160] sm:$0xff]  ;;  %v2429_v57 = vld [vmem:[#allocation2 + $0x58] sm:$0xff] }
  0x50   :  { %525 = vmatpush1.msra.mxu0 %v188_v10  ;;  %686 = vmatpush1.msra.mxu1 %v190_v11  ;;  %v118_v56 = vld [vmem:[#allocation5 + $0x170] sm:$0xff]  ;;  %v109_v58 = vld [vmem:[#allocation5 + $0x128] sm:$0xff]  ;;  %v111_v59 = vld [vmem:[#allocation5 + $0x138] sm:$0xff] }
  0x51   :  { %276 = vmatprep.mubr.f32.mxu0 %v2326_v0  ;;  %437 = vmatprep.mubr.f32.mxu1 %v2326_v0  ;;  %v108_v60 = vld [vmem:[#allocation5 + $0x120] sm:$0xff]  ;;  %v110_v61 = vld [vmem:[#allocation5 + $0x130] sm:$0xff]  ;;  %v101_v63 = vld [vmem:[#allocation5 + $0xe8] sm:$0xff] }
  0x52   :  { %277 = vmatmul.mubr.f32.gmra.mxu0 %v2375_v12  ;;  %438 = vmatmul.mubr.f32.gmra.mxu1 %v2375_v12  ;;  %v2435_v62 = vld [vmem:[#allocation2 + $0x60] sm:$0xff]  ;;  %v103_v1 = vld [vmem:[#allocation5 + $0xf8] sm:$0xff]  ;;  %v102_v4 = vld [vmem:[#allocation5 + $0xf0] sm:$0xff] }
  0x53   :  { %526 = vmatprep.subr.mxu0 %v181_v13  ;;  %687 = vmatprep.subr.mxu1 %v183_v14  ;;  %v100_v3 = vld [vmem:[#allocation5 + $0xe0] sm:$0xff]  ;;  %v2441_v5 = vld [vmem:[#allocation2 + $0x68] sm:$0xff]  ;;  %v95_v8 = vld [vmem:[#allocation5 + $0xb8] sm:$0xff] }
  0x54   :  { %527 = vmatpush1.msra.mxu0 %v180_v15  ;;  %688 = vmatpush1.msra.mxu1 %v182_v16  ;;  %v93_v6 = vld [vmem:[#allocation5 + $0xa8] sm:$0xff]  ;;  %v92_v9 = vld [vmem:[#allocation5 + $0xa0] sm:$0xff]  ;;  %v94_v10 = vld [vmem:[#allocation5 + $0xb0] sm:$0xff] }
  0x55   :  { %282 = vmatprep.mubr.f32.mxu0 %v2326_v0  ;;  %443 = vmatprep.mubr.f32.mxu1 %v2326_v0  ;;  %v2447_v11 = vld [vmem:[#allocation2 + $0x70] sm:$0xff]  ;;  %v85_v13 = vld [vmem:[#allocation5 + $0x68] sm:$0xff]  ;;  %v87_v14 = vld [vmem:[#allocation5 + $0x78] sm:$0xff] }
  0x56   :  { %283 = vmatmul.mubr.f32.gmra.mxu0 %v2381_v17  ;;  %444 = vmatmul.mubr.f32.gmra.mxu1 %v2381_v17  ;;  %v84_v15 = vld [vmem:[#allocation5 + $0x60] sm:$0xff]  ;;  %v86_v16 = vld [vmem:[#allocation5 + $0x70] sm:$0xff] }
  0x57   :  { %528 = vmatprep.subr.mxu0 %v173_v18  ;;  %689 = vmatprep.subr.mxu1 %v175_v19  ;;  %v2453_v18 = vld [vmem:[#allocation2 + $0x78] sm:$0xff]  ;;  %v77_v19 = vld [vmem:[#allocation5 + $0x28] sm:$0xff] }
  0x58   :  { %529 = vmatpush1.msra.mxu0 %v172_v20  ;;  %690 = vmatpush1.msra.mxu1 %v174_v21  ;;  %v79_v20 = vld [vmem:[#allocation5 + $0x38] sm:$0xff]  ;;  %v76_v21 = vld [vmem:[#allocation5 + $0x20] sm:$0xff] }
  0x59   :  { %288 = vmatprep.mubr.f32.mxu0 %v2326_v0  ;;  %449 = vmatprep.mubr.f32.mxu1 %v2326_v0 }
  0x5a   :  { %289 = vmatmul.mubr.f32.gmra.mxu0 %v2387_v22  ;;  %450 = vmatmul.mubr.f32.gmra.mxu1 %v2387_v22 }
  0x5b   :  { %530 = vmatprep.subr.mxu0 %v165_v23  ;;  %691 = vmatprep.subr.mxu1 %v167_v24  ;;  %v78_v23 = vld [vmem:[#allocation5 + $0x30] sm:$0xff] }
  0x5c   :  { %531 = vmatpush1.msra.mxu0 %v164_v25  ;;  %692 = vmatpush1.msra.mxu1 %v166_v26  ;;  %v1418_v24 = vld [vmem:[#allocation7 + $0x1f0] sm:$0xff] }
  0x5d   :  { %294 = vmatprep.mubr.f32.mxu0 %v2326_v0  ;;  %455 = vmatprep.mubr.f32.mxu1 %v2326_v0  ;;  %v1370_v25 = vld [vmem:[#allocation7 + $0x70] sm:$0xff] }
  0x5e   :  { %295 = vmatmul.mubr.f32.gmra.mxu0 %v2393_v27  ;;  %456 = vmatmul.mubr.f32.gmra.mxu1 %v2393_v27  ;;  %v1402_v26 = vld [vmem:[#allocation7 + $0x170] sm:$0xff] }
  0x5f   :  { %532 = vmatprep.subr.mxu0 %v157_v28  ;;  %693 = vmatprep.subr.mxu1 %v159_v29  ;;  %v1417_v28 = vld [vmem:[#allocation7 + $0x1e8] sm:$0xff] }
  0x60   :  { %533 = vmatpush1.msra.mxu0 %v156_v30  ;;  %694 = vmatpush1.msra.mxu1 %v158_v31  ;;  %v1369_v29 = vld [vmem:[#allocation7 + $0x68] sm:$0xff]  ;;  %v1384_v31 = vld [vmem:[#allocation7 + $0xe0] sm:$0xff] }
  0x61   :  { %300 = vmatprep.mubr.f32.mxu0 %v2326_v0  ;;  %461 = vmatprep.mubr.f32.mxu1 %v2326_v0  ;;  %v1401_v30 = vld [vmem:[#allocation7 + $0x168] sm:$0xff] }
  0x62   :  { %301 = vmatmul.mubr.f32.gmra.mxu0 %v2399_v32  ;;  %462 = vmatmul.mubr.f32.gmra.mxu1 %v2399_v32 }
  0x63   :  { %534 = vmatprep.subr.mxu0 %v149_v33  ;;  %695 = vmatprep.subr.mxu1 %v151_v34  ;;  %v1368_v33 = vld [vmem:[#allocation7 + $0x60] sm:$0xff] }
  0x64   :  { %535 = vmatpush1.msra.mxu0 %v148_v35  ;;  %696 = vmatpush1.msra.mxu1 %v150_v36  ;;  %v1400_v34 = vld [vmem:[#allocation7 + $0x160] sm:$0xff]  ;;  %v1383_v35 = vld [vmem:[#allocation7 + $0xd8] sm:$0xff] }
  0x65   :  { %306 = vmatprep.mubr.f32.mxu0 %v2326_v0  ;;  %467 = vmatprep.mubr.f32.mxu1 %v2326_v0  ;;  %v1415_v36 = vld [vmem:[#allocation7 + $0x1d8] sm:$0xff] }
  0x66   :  { %307 = vmatmul.mubr.f32.gmra.mxu0 %v2405_v37  ;;  %468 = vmatmul.mubr.f32.gmra.mxu1 %v2405_v37 }
  0x67   :  { %536 = vmatprep.subr.mxu0 %v141_v38  ;;  %697 = vmatprep.subr.mxu1 %v143_v39  ;;  %v1399_v38 = vld [vmem:[#allocation7 + $0x158] sm:$0xff]  ;;  %v1414_v39 = vld [vmem:[#allocation7 + $0x1d0] sm:$0xff] }
  0x68   :  { %537 = vmatpush1.msra.mxu0 %v140_v40  ;;  %698 = vmatpush1.msra.mxu1 %v142_v41  ;;  %v1366_v40 = vld [vmem:[#allocation7 + $0x50] sm:$0xff] }
  0x69   :  { %312 = vmatprep.mubr.f32.mxu0 %v2326_v0  ;;  %473 = vmatprep.mubr.f32.mxu1 %v2326_v0  ;;  %v1398_v41 = vld [vmem:[#allocation7 + $0x150] sm:$0xff] }
  0x6a   :  { %313 = vmatmul.mubr.f32.gmra.mxu0 %v2411_v42  ;;  %474 = vmatmul.mubr.f32.gmra.mxu1 %v2411_v42 }
  0x6b   :  { %538 = vmatprep.subr.mxu0 %v133_v43  ;;  %699 = vmatprep.subr.mxu1 %v135_v44  ;;  %v1413_v43 = vld [vmem:[#allocation7 + $0x1c8] sm:$0xff] }
  0x6c   :  { %539 = vmatpush1.msra.mxu0 %v132_v45  ;;  %700 = vmatpush1.msra.mxu1 %v134_v46  ;;  %v1365_v44 = vld [vmem:[#allocation7 + $0x48] sm:$0xff]  ;;  %v1380_v46 = vld [vmem:[#allocation7 + $0xc0] sm:$0xff] }
  0x6d   :  { %318 = vmatprep.mubr.f32.mxu0 %v2326_v0  ;;  %479 = vmatprep.mubr.f32.mxu1 %v2326_v0  ;;  %v1397_v45 = vld [vmem:[#allocation7 + $0x148] sm:$0xff] }
  0x6e   :  { %319 = vmatmul.mubr.f32.gmra.mxu0 %v2417_v47  ;;  %480 = vmatmul.mubr.f32.gmra.mxu1 %v2417_v47 }
  0x6f   :  { %540 = vmatprep.subr.mxu0 %v125_v48  ;;  %701 = vmatprep.subr.mxu1 %v127_v49  ;;  %v1364_v48 = vld [vmem:[#allocation7 + $0x40] sm:$0xff] }
  0x70   :  { %541 = vmatpush1.msra.mxu0 %v124_v50  ;;  %702 = vmatpush1.msra.mxu1 %v126_v51  ;;  %v1396_v49 = vld [vmem:[#allocation7 + $0x140] sm:$0xff]  ;;  %v1379_v50 = vld [vmem:[#allocation7 + $0xb8] sm:$0xff] }
  0x71   :  { %324 = vmatprep.mubr.f32.mxu0 %v2326_v0  ;;  %485 = vmatprep.mubr.f32.mxu1 %v2326_v0  ;;  %v1411_v51 = vld [vmem:[#allocation7 + $0x1b8] sm:$0xff] }
  0x72   :  { %325 = vmatmul.mubr.f32.gmra.mxu0 %v2423_v52  ;;  %486 = vmatmul.mubr.f32.gmra.mxu1 %v2423_v52 }
  0x73   :  { %542 = vmatprep.subr.mxu0 %v117_v53  ;;  %703 = vmatprep.subr.mxu1 %v119_v54  ;;  %v1395_v53 = vld [vmem:[#allocation7 + $0x138] sm:$0xff]  ;;  %v1378_v54 = vld [vmem:[#allocation7 + $0xb0] sm:$0xff] }
  0x74   :  { %543 = vmatpush1.msra.mxu0 %v116_v55  ;;  %704 = vmatpush1.msra.mxu1 %v118_v56  ;;  %v1410_v55 = vld [vmem:[#allocation7 + $0x1b0] sm:$0xff] }
  0x75   :  { %330 = vmatprep.mubr.f32.mxu0 %v2326_v0  ;;  %491 = vmatprep.mubr.f32.mxu1 %v2326_v0  ;;  %v1362_v56 = vld [vmem:[#allocation7 + $0x30] sm:$0xff] }
  0x76   :  { %331 = vmatmul.mubr.f32.gmra.mxu0 %v2429_v57  ;;  %492 = vmatmul.mubr.f32.gmra.mxu1 %v2429_v57 }
  0x77   :  { %544 = vmatprep.subr.mxu0 %v109_v58  ;;  %705 = vmatprep.subr.mxu1 %v111_v59  ;;  %v1377_v58 = vld [vmem:[#allocation7 + $0xa8] sm:$0xff] }
  0x78   :  { %545 = vmatpush1.msra.mxu0 %v108_v60  ;;  %706 = vmatpush1.msra.mxu1 %v110_v61  ;;  %v1409_v59 = vld [vmem:[#allocation7 + $0x1a8] sm:$0xff] }
  0x79   :  { %336 = vmatprep.mubr.f32.mxu0 %v2326_v0  ;;  %497 = vmatprep.mubr.f32.mxu1 %v2326_v0  ;;  %v1361_v60 = vld [vmem:[#allocation7 + $0x28] sm:$0xff] }
  0x7a   :  { %337 = vmatmul.mubr.f32.gmra.mxu0 %v2435_v62  ;;  %498 = vmatmul.mubr.f32.gmra.mxu1 %v2435_v62  ;;  %v1393_v61 = vld [vmem:[#allocation7 + $0x128] sm:$0xff] }
  0x7b   :  { %546 = vmatprep.subr.mxu0 %v101_v63  ;;  %707 = vmatprep.subr.mxu1 %v103_v1  ;;  %v1408_v63 = vld [vmem:[#allocation7 + $0x1a0] sm:$0xff] }
  0x7c   :  { %547 = vmatpush1.msra.mxu0 %v100_v3  ;;  %708 = vmatpush1.msra.mxu1 %v102_v4  ;;  %v1360_v1 = vld [vmem:[#allocation7 + $0x20] sm:$0xff]  ;;  %v1375_v4 = vld [vmem:[#allocation7 + $0x98] sm:$0xff] }
  0x7d   :  { %342 = vmatprep.mubr.f32.mxu0 %v2326_v0  ;;  %503 = vmatprep.mubr.f32.mxu1 %v2326_v0  ;;  %v1392_v3 = vld [vmem:[#allocation7 + $0x120] sm:$0xff] }
  0x7e   :  { %343 = vmatmul.mubr.f32.gmra.mxu0 %v2441_v5  ;;  %504 = vmatmul.mubr.f32.gmra.mxu1 %v2441_v5 }
  0x7f   :  { %548 = vmatprep.subr.mxu0 %v93_v6  ;;  %709 = vmatprep.subr.mxu1 %v95_v8  ;;  %v1359_v6 = vld [vmem:[#allocation7 + $0x18] sm:$0xff] }
  0x80   :  { %549 = vmatpush1.msra.mxu0 %v92_v9  ;;  %710 = vmatpush1.msra.mxu1 %v94_v10  ;;  %v1391_v8 = vld [vmem:[#allocation7 + $0x118] sm:$0xff]  ;;  %v1374_v9 = vld [vmem:[#allocation7 + $0x90] sm:$0xff] }
  0x81   :  { %348 = vmatprep.mubr.f32.mxu0 %v2326_v0  ;;  %509 = vmatprep.mubr.f32.mxu1 %v2326_v0  ;;  %v1406_v10 = vld [vmem:[#allocation7 + $0x190] sm:$0xff] }
  0x82   :  { %349 = vmatmul.mubr.f32.gmra.mxu0 %v2447_v11  ;;  %510 = vmatmul.mubr.f32.gmra.mxu1 %v2447_v11 }
  0x83   :  { %550 = vmatprep.subr.mxu0 %v85_v13  ;;  %711 = vmatprep.subr.mxu1 %v87_v14  ;;  %v1390_v13 = vld [vmem:[#allocation7 + $0x110] sm:$0xff]  ;;  %v1373_v14 = vld [vmem:[#allocation7 + $0x88] sm:$0xff] }
  0x84   :  { %551 = vmatpush1.msra.mxu0 %v84_v15  ;;  %712 = vmatpush1.msra.mxu1 %v86_v16  ;;  %v1405_v15 = vld [vmem:[#allocation7 + $0x188] sm:$0xff] }
  0x85   :  { %354 = vmatprep.mubr.f32.mxu0 %v2326_v0  ;;  %515 = vmatprep.mubr.f32.mxu1 %v2326_v0  ;;  %v1357_v16 = vld [vmem:[#allocation7 + $0x8] sm:$0xff] }
  0x86   :  { %355 = vmatmul.mubr.f32.gmra.mxu0 %v2453_v18  ;;  %516 = vmatmul.mubr.f32.gmra.mxu1 %v2453_v18 }
  0x87   :  { %552 = vmatprep.subr.mxu0 %v77_v19  ;;  %713 = vmatprep.subr.mxu1 %v79_v20  ;;  %v1372_v19 = vld [vmem:[#allocation7 + $0x80] sm:$0xff] }
  0x88   :  { %553 = vmatpush1.msra.mxu0 %v76_v21  ;;  %714 = vmatpush1.msra.mxu1 %v78_v23  ;;  %v1404_v20 = vld [vmem:[#allocation7 + $0x180] sm:$0xff] }
  0x89   :  { %586 = vmatprep.mubr.f32.mxu0 %v2326_v0  ;;  %747 = vmatprep.mubr.f32.mxu1 %v2326_v0  ;;  %v1356_v21 = vld [vmem:[#allocation7] sm:$0xff] }
  0x8a   :  { %587 = vmatmul.mubr.f32.vlgmr.msra.gmra.mxu0 %v2365_v2  ;;  %748 = vmatmul.mubr.f32.vlgmr.msra.gmra.mxu1 %v2365_v2  ;;  %v1387_v2 = vld [vmem:[#allocation7 + $0xf8] sm:$0xff]  ;;  %v1388_v23 = vld [vmem:[#allocation7 + $0x100] sm:$0xff] }
  0x8b   :  { %592 = vmatprep.mubr.f32.mxu0 %v2326_v0  ;;  %753 = vmatprep.mubr.f32.mxu1 %v2326_v0 }
  0x8c   :  { %1808 = vmatprep.subr.mxu0 %v1387_v2 }
  0x8e   :  { %593 = vmatmul.mubr.f32.gmra.mxu0 %v2369_v7  ;;  %754 = vmatmul.mubr.f32.gmra.mxu1 %v2369_v7  ;;  %v1419_v7 = vld [vmem:[#allocation7 + $0x1f8] sm:$0xff] }
  0x8f   :  { %598 = vmatprep.mubr.f32.mxu0 %v2326_v0  ;;  %759 = vmatprep.mubr.f32.mxu1 %v2326_v0 }
  0x90   :  { %1888 = vmatprep.subr.mxu1 %v1419_v7 }
  0x92   :  { %599 = vmatmul.mubr.f32.gmra.mxu0 %v2375_v12  ;;  %760 = vmatmul.mubr.f32.gmra.mxu1 %v2375_v12  ;;  %v1371_v12 = vld [vmem:[#allocation7 + $0x78] sm:$0xff] }
  0x93   :  { %604 = vmatprep.mubr.f32.mxu0 %v2326_v0  ;;  %765 = vmatprep.mubr.f32.mxu1 %v2326_v0 }
  0x94   :  { %1809 = vmatpush3.msra.mxu0 %v1371_v12 }
  0x96   :  { %605 = vmatmul.mubr.f32.gmra.mxu0 %v2381_v17  ;;  %766 = vmatmul.mubr.f32.gmra.mxu1 %v2381_v17  ;;  %v1403_v17 = vld [vmem:[#allocation7 + $0x178] sm:$0xff] }
  0x97   :  { %610 = vmatprep.mubr.f32.mxu0 %v2326_v0  ;;  %771 = vmatprep.mubr.f32.mxu1 %v2326_v0 }
  0x98   :  { %1889 = vmatpush3.msra.mxu1 %v1403_v17 }
  0x99   :  { %1890 = vmatprep.subr.mxu1 %v1418_v24 }
  0x9a   :  { %611 = vmatmul.mubr.f32.gmra.mxu0 %v2387_v22  ;;  %772 = vmatmul.mubr.f32.gmra.mxu1 %v2387_v22  ;;  %v1386_v22 = vld [vmem:[#allocation7 + $0xf0] sm:$0xff] }
  0x9b   :  { %616 = vmatprep.mubr.f32.mxu0 %v2326_v0  ;;  %777 = vmatprep.mubr.f32.mxu1 %v2326_v0 }
  0x9c   :  { %1810 = vmatprep.subr.mxu0 %v1386_v22  ;;  %1891 = vmatpush3.msra.mxu1 %v1402_v26 }
  0x9d   :  { %1811 = vmatpush3.msra.mxu0 %v1370_v25  ;;  %1892 = vmatprep.subr.mxu1 %v1417_v28 }
  0x9e   :  { %617 = vmatmul.mubr.f32.gmra.mxu0 %v2393_v27  ;;  %778 = vmatmul.mubr.f32.gmra.mxu1 %v2393_v27  ;;  %v1385_v27 = vld [vmem:[#allocation7 + $0xe8] sm:$0xff] }
  0x9f   :  { %622 = vmatprep.mubr.f32.mxu0 %v2326_v0  ;;  %783 = vmatprep.mubr.f32.mxu1 %v2326_v0 }
  0xa0   :  { %1812 = vmatprep.subr.mxu0 %v1385_v27  ;;  %1893 = vmatpush3.msra.mxu1 %v1401_v30 }
  0xa1   :  { %1813 = vmatpush3.msra.mxu0 %v1369_v29 }
  0xa2   :  { %623 = vmatmul.mubr.f32.gmra.mxu0 %v2399_v32  ;;  %784 = vmatmul.mubr.f32.gmra.mxu1 %v2399_v32  ;;  %v1416_v32 = vld [vmem:[#allocation7 + $0x1e0] sm:$0xff] }
  0xa3   :  { %628 = vmatprep.mubr.f32.mxu0 %v2326_v0  ;;  %789 = vmatprep.mubr.f32.mxu1 %v2326_v0 }
  0xa4   :  { %1814 = vmatprep.subr.mxu0 %v1384_v31  ;;  %1894 = vmatprep.subr.mxu1 %v1416_v32 }
  0xa5   :  { %1815 = vmatpush3.msra.mxu0 %v1368_v33  ;;  %1895 = vmatpush3.msra.mxu1 %v1400_v34 }
  0xa6   :  { %629 = vmatmul.mubr.f32.gmra.mxu0 %v2405_v37  ;;  %790 = vmatmul.mubr.f32.gmra.mxu1 %v2405_v37  ;;  %v1367_v37 = vld [vmem:[#allocation7 + $0x58] sm:$0xff] }
  0xa7   :  { %634 = vmatprep.mubr.f32.mxu0 %v2326_v0  ;;  %795 = vmatprep.mubr.f32.mxu1 %v2326_v0 }
  0xa8   :  { %1816 = vmatprep.subr.mxu0 %v1383_v35  ;;  %1896 = vmatprep.subr.mxu1 %v1415_v36 }
  0xa9   :  { %1817 = vmatpush3.msra.mxu0 %v1367_v37  ;;  %1897 = vmatpush3.msra.mxu1 %v1399_v38 }
  0xaa   :  { %635 = vmatmul.mubr.f32.gmra.mxu0 %v2411_v42  ;;  %796 = vmatmul.mubr.f32.gmra.mxu1 %v2411_v42  ;;  %v1381_v42 = vld [vmem:[#allocation7 + $0xc8] sm:$0xff] }
  0xab   :  { %640 = vmatprep.mubr.f32.mxu0 %v2326_v0  ;;  %801 = vmatprep.mubr.f32.mxu1 %v2326_v0 }
  0xac   :  { %1898 = vmatprep.subr.mxu1 %v1414_v39 }
  0xad   :  { %1899 = vmatpush3.msra.mxu1 %v1398_v41 }
  0xae   :  { %641 = vmatmul.mubr.f32.gmra.mxu0 %v2417_v47  ;;  %802 = vmatmul.mubr.f32.gmra.mxu1 %v2417_v47  ;;  %v1412_v47 = vld [vmem:[#allocation7 + $0x1c0] sm:$0xff] }
  0xaf   :  { %646 = vmatprep.mubr.f32.mxu0 %v2326_v0  ;;  %807 = vmatprep.mubr.f32.mxu1 %v2326_v0 }
  0xb0   :  { %1900 = vmatprep.subr.mxu1 %v1413_v43 }
  0xb1   :  { %1901 = vmatpush3.msra.mxu1 %v1397_v45 }
  0xb2   :  { %647 = vmatmul.mubr.f32.gmra.mxu0 %v2423_v52  ;;  %808 = vmatmul.mubr.f32.gmra.mxu1 %v2423_v52  ;;  %v1363_v52 = vld [vmem:[#allocation7 + $0x38] sm:$0xff] }
  0xb3   :  { %652 = vmatprep.mubr.f32.mxu0 %v2326_v0  ;;  %813 = vmatprep.mubr.f32.mxu1 %v2326_v0 }
  0xb4   :  { %1902 = vmatprep.subr.mxu1 %v1412_v47 }
  0xb5   :  { %1903 = vmatpush3.msra.mxu1 %v1396_v49 }
  0xb6   :  { %653 = vmatmul.mubr.f32.gmra.mxu0 %v2429_v57  ;;  %814 = vmatmul.mubr.f32.gmra.mxu1 %v2429_v57  ;;  %v1394_v57 = vld [vmem:[#allocation7 + $0x130] sm:$0xff] }
  0xb7   :  { %658 = vmatprep.mubr.f32.mxu0 %v2326_v0  ;;  %819 = vmatprep.mubr.f32.mxu1 %v2326_v0 }
  0xb8   :  { %1904 = vmatprep.subr.mxu1 %v1411_v51 }
  0xb9   :  { %1905 = vmatpush3.msra.mxu1 %v1395_v53 }
  0xba   :  { %659 = vmatmul.mubr.f32.gmra.mxu0 %v2435_v62  ;;  %820 = vmatmul.mubr.f32.gmra.mxu1 %v2435_v62  ;;  %v1376_v62 = vld [vmem:[#allocation7 + $0xa0] sm:$0xff] }
  0xbb   :  { %664 = vmatprep.mubr.f32.mxu0 %v2326_v0  ;;  %825 = vmatprep.mubr.f32.mxu1 %v2326_v0 }
  0xbc   :  { %1906 = vmatprep.subr.mxu1 %v1410_v55 }
  0xbd   :  { %1907 = vmatpush3.msra.mxu1 %v1394_v57 }
  0xbe   :  { %665 = vmatmul.mubr.f32.gmra.mxu0 %v2441_v5  ;;  %826 = vmatmul.mubr.f32.gmra.mxu1 %v2441_v5  ;;  %v1407_v5 = vld [vmem:[#allocation7 + $0x198] sm:$0xff] }
  0xbf   :  { %670 = vmatprep.mubr.f32.mxu0 %v2326_v0  ;;  %831 = vmatprep.mubr.f32.mxu1 %v2326_v0 }
  0xc0   :  { %1908 = vmatprep.subr.mxu1 %v1409_v59 }
  0xc1   :  { %1909 = vmatpush3.msra.mxu1 %v1393_v61 }
  0xc2   :  { %671 = vmatmul.mubr.f32.gmra.mxu0 %v2447_v11  ;;  %832 = vmatmul.mubr.f32.gmra.mxu1 %v2447_v11  ;;  %v1358_v11 = vld [vmem:[#allocation7 + $0x10] sm:$0xff] }
  0xc3   :  { %676 = vmatprep.mubr.f32.mxu0 %v2326_v0  ;;  %837 = vmatprep.mubr.f32.mxu1 %v2326_v0  ;;  %v1382_v0 = vld [vmem:[#allocation7 + $0xd0] sm:$0xff] }
  0xc4   :  { %1818 = vmatprep.subr.mxu0 %v1382_v0  ;;  %1910 = vmatprep.subr.mxu1 %v1408_v63 }
  0xc5   :  { %1819 = vmatpush3.msra.mxu0 %v1366_v40  ;;  %1911 = vmatpush3.msra.mxu1 %v1392_v3 }
  0xc6   :  { %677 = vmatmul.mubr.f32.gmra.mxu0 %v2453_v18  ;;  %838 = vmatmul.mubr.f32.gmra.mxu1 %v2453_v18  ;;  %v1389_v18 = vld [vmem:[#allocation7 + $0x108] sm:$0xff] }
  0xc7   :  { %1820 = vmatprep.subr.mxu0 %v1381_v42  ;;  %1912 = vmatprep.subr.mxu1 %v1407_v5 }
  0xc8   :  { %1821 = vmatpush3.msra.mxu0 %v1365_v44  ;;  %1913 = vmatpush3.msra.mxu1 %v1391_v8 }
  0xc9   :  { %1822 = vmatprep.subr.mxu0 %v1380_v46  ;;  %1914 = vmatprep.subr.mxu1 %v1406_v10 }
  0xca   :  { %1823 = vmatpush3.msra.mxu0 %v1364_v48  ;;  %1915 = vmatpush3.msra.mxu1 %v1390_v13 }
  0xcb   :  { %1824 = vmatprep.subr.mxu0 %v1379_v50  ;;  %1916 = vmatprep.subr.mxu1 %v1405_v15 }
  0xcc   :  { %1825 = vmatpush3.msra.mxu0 %v1363_v52  ;;  %1917 = vmatpush3.msra.mxu1 %v1389_v18 }
  0xcd   :  { %1826 = vmatprep.subr.mxu0 %v1378_v54  ;;  %1918 = vmatprep.subr.mxu1 %v1404_v20 }
  0xce   :  { %1827 = vmatpush3.msra.mxu0 %v1362_v56  ;;  %1919 = vmatpush3.msra.mxu1 %v1388_v23 }
  0xcf   :  { %1828 = vmatprep.subr.mxu0 %v1377_v58 }
  0xd0   :  { %1829 = vmatpush3.msra.mxu0 %v1361_v60 }
  0xd1   :  { %1830 = vmatprep.subr.mxu0 %v1376_v62 }
  0xd2   :  { %1831 = vmatpush3.msra.mxu0 %v1360_v1 }
  0xd3   :  { %1832 = vmatprep.subr.mxu0 %v1375_v4 }
  0xd4   :  { %1833 = vmatpush3.msra.mxu0 %v1359_v6 }
  0xd5   :  { %1834 = vmatprep.subr.mxu0 %v1374_v9 }
  0xd6   :  { %1835 = vmatpush3.msra.mxu0 %v1358_v11 }
  0xd7   :  { %1836 = vmatprep.subr.mxu0 %v1373_v14 }
  0xd8   :  { %1837 = vmatpush3.msra.mxu0 %v1357_v16 }
  0xd9   :  { %1838 = vmatprep.subr.mxu0 %v1372_v19 }
  0xda   :  { %1839 = vmatpush3.msra.mxu0 %v1356_v21 }
 0x10a   :  { %v2523_v2 = vpop.f32.mrf.mxu0  ;;  %v2525_v7 = vpop.f32.mrf.mxu1 }
 0x10b   :  { %v1744_v12 = vmul.f32 -1.442695, %v2523_v2  ;;  %v1746_v17 = vmul.f32 -1.442695, %v2525_v7 }
 0x10c   :  { %v2529_v22 = vpop.f32.mrf.mxu0  ;;  %v2531_v24 = vpop.f32.mrf.mxu1 }
 0x10d   :  { %1977 = vpow2.f32 %v1744_v12  ;;  %v1745_v25 = vmul.f32 -1.442695, %v2529_v22  ;;  %v1747_v26 = vmul.f32 -1.442695, %v2531_v24 }
 0x10e   :  { %1979 = vpow2.f32 %v1746_v17  ;;  %v2535_v27 = vpop.f32.mrf.mxu0  ;;  %v2537_v28 = vpop.f32.mrf.mxu1 }
 0x10f   :  { %1981 = vpow2.f32 %v1745_v25  ;;  %v1748_v29 = vmul.f32 -1.442695, %v2535_v27  ;;  %v1750_v30 = vmul.f32 -1.442695, %v2537_v28 }
 0x110   :  { %1983 = vpow2.f32 %v1747_v26  ;;  %v2541_v31 = vpop.f32.mrf.mxu0  ;;  %v2543_v32 = vpop.f32.mrf.mxu1 }
 0x111   :  { %1985 = vpow2.f32 %v1748_v29  ;;  %v1749_v33 = vmul.f32 -1.442695, %v2541_v31  ;;  %v1751_v34 = vmul.f32 -1.442695, %v2543_v32 }
 0x112   :  { %1987 = vpow2.f32 %v1750_v30  ;;  %v2547_v35 = vpop.f32.mrf.mxu0  ;;  %v2549_v36 = vpop.f32.mrf.mxu1 }
 0x113   :  { %1989 = vpow2.f32 %v1749_v33  ;;  %v1752_v37 = vmul.f32 -1.442695, %v2547_v35  ;;  %v1754_v38 = vmul.f32 -1.442695, %v2549_v36 }
 0x114   :  { %1991 = vpow2.f32 %v1751_v34  ;;  %v2553_v0 = vpop.f32.mrf.mxu0  ;;  %v2555_v39 = vpop.f32.mrf.mxu1 }
 0x115   :  { %1993 = vpow2.f32 %v1752_v37  ;;  %v1753_v40 = vmul.f32 -1.442695, %v2553_v0  ;;  %v1755_v41 = vmul.f32 -1.442695, %v2555_v39 }
 0x116   :  { %1995 = vpow2.f32 %v1754_v38  ;;  %v2559_v42 = vpop.f32.mrf.mxu0  ;;  %v2561_v43 = vpop.f32.mrf.mxu1 }
 0x117   :  { %1997 = vpow2.f32 %v1753_v40  ;;  %v1756_v44 = vmul.f32 -1.442695, %v2559_v42  ;;  %v1758_v45 = vmul.f32 -1.442695, %v2561_v43 }
 0x118   :  { %1999 = vpow2.f32 %v1755_v41  ;;  %v2565_v46 = vpop.f32.mrf.mxu0  ;;  %v2567_v47 = vpop.f32.mrf.mxu1 }
 0x119   :  { %2001 = vpow2.f32 %v1756_v44  ;;  %v1757_v48 = vmul.f32 -1.442695, %v2565_v46  ;;  %v1759_v49 = vmul.f32 -1.442695, %v2567_v47 }
 0x11a   :  { %v1978_v50 = vpop.eup %1977  ;;  %2003 = vpow2.f32 %v1758_v45  ;;  %v2571_v51 = vpop.f32.mrf.mxu0 }
 0x11b   :  { %2932 = vst [vmem:[#allocation12_spill] sm:$0xff] %v2571_v51  ;;  %v2573_v52 = vpop.f32.mrf.mxu1  ;;  %v1980_v53 = vpop.eup %1979  ;;  %v1036_v54 = vadd.f32 1.0, %v1978_v50  ;;  %2005 = vpow2.f32 %v1757_v48 }
 0x11c   :  { %2933 = vst [vmem:[#allocation13_spill] sm:$0xff] %v2573_v52  ;;  %v1982_v55 = vpop.eup %1981  ;;  %v1038_v56 = vadd.f32 1.0, %v1980_v53  ;;  %2007 = vpow2.f32 %v1759_v49  ;;  %v2575_v57 = vpop.f32.mrf.mxu0  ;;  %v1760_v49 = vmul.f32 -1.442695, %v2571_v51 }
 0x11d   :  { %2934 = vst [vmem:[#allocation14_spill] sm:$0xff] %v2575_v57  ;;  %v2577_v58 = vpop.f32.mrf.mxu1  ;;  %v1984_v59 = vpop.eup %1983  ;;  %2009 = vrcp.f32 %v1036_v54  ;;  %v1037_v60 = vadd.f32 1.0, %v1982_v55  ;;  %v1762_v54 = vmul.f32 -1.442695, %v2573_v52 }
 0x11e   :  { %2935 = vst [vmem:[#allocation15_spill] sm:$0xff] %v2577_v58  ;;  %v1986_v61 = vpop.eup %1985  ;;  %2011 = vrcp.f32 %v1038_v56  ;;  %v1039_v62 = vadd.f32 1.0, %v1984_v59  ;;  %v2579_v63 = vpop.f32.mrf.mxu0 }
 0x11f   :  { %2936 = vst [vmem:[#allocation16_spill] sm:$0xff] %v2579_v63  ;;  %v2581_v1 = vpop.f32.mrf.mxu1  ;;  %v1988_v3 = vpop.eup %1987  ;;  %2013 = vrcp.f32 %v1037_v60  ;;  %v1040_v4 = vadd.f32 1.0, %v1986_v61  ;;  %v1761_v60 = vmul.f32 -1.442695, %v2575_v57 }
 0x120   :  { %2937 = vst [vmem:[#allocation17_spill] sm:$0xff] %v2581_v1  ;;  %v1990_v5 = vpop.eup %1989  ;;  %2015 = vrcp.f32 %v1039_v62  ;;  %v1042_v6 = vadd.f32 1.0, %v1988_v3  ;;  %v2583_v8 = vpop.f32.mrf.mxu0  ;;  %v1763_v62 = vmul.f32 -1.442695, %v2577_v58 }
 0x121   :  { %2938 = vst [vmem:[#allocation18_spill] sm:$0xff] %v2583_v8  ;;  %v2585_v9 = vpop.f32.mrf.mxu1  ;;  %v1992_v10 = vpop.eup %1991  ;;  %2017 = vrcp.f32 %v1040_v4  ;;  %v1041_v11 = vadd.f32 1.0, %v1990_v5 }
 0x122   :  { %2939 = vst [vmem:[#allocation19_spill] sm:$0xff] %v2585_v9  ;;  %v1994_v13 = vpop.eup %1993  ;;  %2019 = vrcp.f32 %v1042_v6  ;;  %v1043_v14 = vadd.f32 1.0, %v1992_v10  ;;  %v2587_v15 = vpop.f32.mrf.mxu0  ;;  %v1764_v6 = vmul.f32 -1.442695, %v2579_v63 }
 0x123   :  { %2940 = vst [vmem:[#allocation20_spill] sm:$0xff] %v2587_v15  ;;  %v2589_v16 = vpop.f32.mrf.mxu1  ;;  %v1996_v18 = vpop.eup %1995  ;;  %2021 = vrcp.f32 %v1041_v11  ;;  %v1044_v19 = vadd.f32 1.0, %v1994_v13  ;;  %v1766_v11 = vmul.f32 -1.442695, %v2581_v1 }
 0x124   :  { %2941 = vst [vmem:[#allocation21_spill] sm:$0xff] %v2589_v16  ;;  %v1998_v20 = vpop.eup %1997  ;;  %2023 = vrcp.f32 %v1043_v14  ;;  %v1046_v21 = vadd.f32 1.0, %v1996_v18  ;;  %v2591_v23 = vpop.f32.mrf.mxu0 }
 0x125   :  { %2942 = vst [vmem:[#allocation22_spill] sm:$0xff] %v2591_v23  ;;  %v2593_v12 = vpop.f32.mrf.mxu1  ;;  %v2000_v17 = vpop.eup %1999  ;;  %2025 = vrcp.f32 %v1044_v19  ;;  %v1045_v25 = vadd.f32 1.0, %v1998_v20  ;;  %v1765_v19 = vmul.f32 -1.442695, %v2583_v8 }
 0x126   :  { %2943 = vst [vmem:[#allocation23_spill] sm:$0xff] %v2593_v12  ;;  %v2002_v26 = vpop.eup %2001  ;;  %2027 = vrcp.f32 %v1046_v21  ;;  %v1047_v29 = vadd.f32 1.0, %v2000_v17  ;;  %v2595_v30 = vpop.f32.mrf.mxu0  ;;  %v1767_v21 = vmul.f32 -1.442695, %v2585_v9 }
 0x127   :  { %2944 = vst [vmem:[#allocation24_spill] sm:$0xff] %v2595_v30  ;;  %v2597_v33 = vpop.f32.mrf.mxu1  ;;  %v2004_v34 = vpop.eup %2003  ;;  %2029 = vrcp.f32 %v1045_v25  ;;  %v1048_v37 = vadd.f32 1.0, %v2002_v26 }
 0x128   :  { %2945 = vst [vmem:[#allocation25_spill] sm:$0xff] %v2597_v33  ;;  %v2006_v38 = vpop.eup %2005  ;;  %2031 = vrcp.f32 %v1047_v29  ;;  %v1050_v40 = vadd.f32 1.0, %v2004_v34  ;;  %v2599_v41 = vpop.f32.mrf.mxu0  ;;  %v1768_v29 = vmul.f32 -1.442695, %v2587_v15 }
 0x129   :  { %2946 = vst [vmem:[#allocation26_spill] sm:$0xff] %v2599_v41  ;;  %v2601_v44 = vpop.f32.mrf.mxu1  ;;  %v2008_v45 = vpop.eup %2007  ;;  %2033 = vrcp.f32 %v1048_v37  ;;  %v1049_v48 = vadd.f32 1.0, %v2006_v38  ;;  %v1770_v37 = vmul.f32 -1.442695, %v2589_v16 }
 0x12a   :  { %2947 = vst [vmem:[#allocation27_spill] sm:$0xff] %v2601_v44  ;;  %v2604_v50 = vpop.eup %2009  ;;  %2035 = vrcp.f32 %v1050_v40  ;;  %v1051_v53 = vadd.f32 1.0, %v2008_v45  ;;  %v2607_v55 = vpop.f32.mrf.mxu0 }
 0x12b   :  { %2948 = vst [vmem:[#allocation28_spill] sm:$0xff] %v2607_v55  ;;  %v2609_v56 = vpop.f32.mrf.mxu1  ;;  %v2611_v59 = vpop.eup %2011  ;;  %2037 = vrcp.f32 %v1049_v48  ;;  %v1769_v48 = vmul.f32 -1.442695, %v2591_v23 }
 0x12c   :  { %2949 = vst [vmem:[#allocation29_spill] sm:$0xff] %v2609_v56  ;;  %v2614_v61 = vpop.eup %2013  ;;  %2039 = vrcp.f32 %v1051_v53  ;;  %v2617_v3 = vpop.f32.mrf.mxu0  ;;  %v1771_v53 = vmul.f32 -1.442695, %v2593_v12  ;;  %v1773_v12 = vmul.f32 -1.442695, %v2599_v41 }
 0x12d   :  { %v2619_v4 = vpop.f32.mrf.mxu1  ;;  %v2621_v5 = vpop.eup %2015  ;;  %2041 = vpow2.f32 %v1760_v49 }
 0x12e   :  { %2950 = vst [vmem:[#allocation30_spill] sm:$0xff] %v2619_v4  ;;  %v2624_v10 = vpop.eup %2017  ;;  %2043 = vpow2.f32 %v1762_v54  ;;  %v2627_v13 = vpop.f32.mrf.mxu0 }
 0x12f   :  { %v2629_v14 = vpop.f32.mrf.mxu1  ;;  %v2631_v18 = vpop.eup %2019  ;;  %2045 = vpow2.f32 %v1761_v60 }
 0x130   :  { %v2634_v20 = vpop.eup %2021  ;;  %2047 = vpow2.f32 %v1763_v62  ;;  %v2637_v17 = vpop.f32.mrf.mxu0 }
 0x131   :  { %v2639_v25 = vpop.f32.mrf.mxu1  ;;  %v2641_v26 = vpop.eup %2023  ;;  %2049 = vpow2.f32 %v1764_v6  ;;  %v1772_v6 = vmul.f32 -1.442695, %v2595_v30 }
 0x132   :  { %v2644_v34 = vpop.eup %2025  ;;  %2051 = vpow2.f32 %v1766_v11  ;;  %v2647_v38 = vpop.f32.mrf.mxu0 }
 0x133   :  { %v2649_v40 = vpop.f32.mrf.mxu1  ;;  %v2651_v45 = vpop.eup %2027  ;;  %2053 = vpow2.f32 %v1765_v19  ;;  %v1774_v19 = vmul.f32 -1.442695, %v2597_v33 }
 0x134   :  { %v2654_v49 = vpop.eup %2029  ;;  %2055 = vpow2.f32 %v1767_v21  ;;  %v2657_v54 = vpop.f32.mrf.mxu0 }
 0x135   :  { %v2659_v60 = vpop.f32.mrf.mxu1  ;;  %v2661_v62 = vpop.eup %2031  ;;  %2057 = vpow2.f32 %v1768_v29  ;;  %v1775_v29 = vmul.f32 -1.442695, %v2601_v44 }
 0x136   :  { %v2664_v11 = vpop.eup %2033  ;;  %2059 = vpow2.f32 %v1770_v37  ;;  %v2667_v16 = vpop.f32.mrf.mxu0 }
 0x137   :  { %v2669_v15 = vpop.f32.mrf.mxu1  ;;  %v2671_v21 = vpop.eup %2035  ;;  %2061 = vpow2.f32 %v1769_v48 }
 0x138   :  { %v2674_v23 = vpop.eup %2037  ;;  %2063 = vpow2.f32 %v1771_v53  ;;  %v2677_v30 = vpop.f32.mrf.mxu0 }
 0x139   :  { %v2679_v1 = vpop.f32.mrf.mxu1  ;;  %v2681_v37 = vpop.eup %2039  ;;  %2065 = vpow2.f32 %v1772_v6 }
 0x13a   :  { %v2042_v33 = vpop.eup %2041  ;;  %2067 = vpow2.f32 %v1774_v19  ;;  %v2683_v63 = vpop.f32.mrf.mxu0 }
 0x13b   :  { %2951 = vst [vmem:[#allocation31_spill] sm:$0xff] %v2683_v63  ;;  %v2685_v9 = vpop.f32.mrf.mxu1  ;;  %v2044_v48 = vpop.eup %2043  ;;  %v1052_v41 = vadd.f32 1.0, %v2042_v33  ;;  %2069 = vpow2.f32 %v1773_v12 }
 0x13c   :  { %2952 = vst [vmem:[#allocation32_spill] sm:$0xff] %v2685_v9  ;;  %v2046_v8 = vpop.eup %2045  ;;  %v1054_v53 = vadd.f32 1.0, %v2044_v48  ;;  %2071 = vpow2.f32 %v1775_v29  ;;  %v2687_v44 = vpop.f32.mrf.mxu0 }
 0x13d   :  { %2953 = vst [vmem:[#allocation33_spill] sm:$0xff] %v2687_v44  ;;  %v2689_v52 = vpop.f32.mrf.mxu1  ;;  %v2048_v51 = vpop.eup %2047  ;;  %2073 = vrcp.f32 %v1052_v41  ;;  %v1053_v58 = vadd.f32 1.0, %v2046_v8 }
 0x13e   :  { %2954 = vst [vmem:[#allocation34_spill] sm:$0xff] %v2689_v52  ;;  %v2050_v6 = vpop.eup %2049  ;;  %2075 = vrcp.f32 %v1054_v53  ;;  %v1055_v19 = vadd.f32 1.0, %v2048_v51  ;;  %v2691_v57 = vpop.f32.mrf.mxu0 }
 0x13f   :  { %2955 = vst [vmem:[#allocation35_spill] sm:$0xff] %v2691_v57  ;;  %v2693_v63 = vpop.f32.mrf.mxu1  ;;  %v2052_v9 = vpop.eup %2051  ;;  %2077 = vrcp.f32 %v1053_v58  ;;  %v1056_v12 = vadd.f32 1.0, %v2050_v6 }
 0x140   :  { %2956 = vst [vmem:[#allocation36_spill] sm:$0xff] %v2693_v63  ;;  %v2054_v33 = vpop.eup %2053  ;;  %2079 = vrcp.f32 %v1055_v19  ;;  %v1058_v29 = vadd.f32 1.0, %v2052_v9  ;;  %v2695_v48 = vpop.f32.mrf.mxu0 }
 0x141   :  { %2957 = vst [vmem:[#allocation37_spill] sm:$0xff] %v2695_v48  ;;  %v2697_v44 = vpop.f32.mrf.mxu1  ;;  %v2056_v52 = vpop.eup %2055  ;;  %2081 = vrcp.f32 %v1056_v12  ;;  %v1057_v8 = vadd.f32 1.0, %v2054_v33 }
 0x142   :  { %2958 = vst [vmem:[#allocation38_spill] sm:$0xff] %v2697_v44  ;;  %v2058_v41 = vpop.eup %2057  ;;  %2083 = vrcp.f32 %v1058_v29  ;;  %v1059_v51 = vadd.f32 1.0, %v2056_v52  ;;  %v2699_v53 = vpop.f32.mrf.mxu0 }
 0x143   :  { %2959 = vst [vmem:[#allocation39_spill] sm:$0xff] %v2699_v53  ;;  %v2701_v57 = vpop.f32.mrf.mxu1  ;;  %v2060_v63 = vpop.eup %2059  ;;  %2085 = vrcp.f32 %v1057_v8  ;;  %v1060_v58 = vadd.f32 1.0, %v2058_v41 }
 0x144   :  { %2960 = vst [vmem:[#allocation40_spill] sm:$0xff] %v2701_v57  ;;  %v2062_v6 = vpop.eup %2061  ;;  %2087 = vrcp.f32 %v1059_v51  ;;  %v1062_v9 = vadd.f32 1.0, %v2060_v63  ;;  %v2703_v19 = vpop.f32.mrf.mxu0 }
 0x145   :  { %2961 = vst [vmem:[#allocation41_spill] sm:$0xff] %v2703_v19  ;;  %v2705_v48 = vpop.f32.mrf.mxu1  ;;  %v2064_v44 = vpop.eup %2063  ;;  %2089 = vrcp.f32 %v1060_v58  ;;  %v1061_v12 = vadd.f32 1.0, %v2062_v6  ;;  %v1776_v6 = vmul.f32 -1.442695, %v2607_v55 }
 0x146   :  { %2962 = vst [vmem:[#allocation42_spill] sm:$0xff] %v2705_v48  ;;  %v2066_v33 = vpop.eup %2065  ;;  %2091 = vrcp.f32 %v1062_v9  ;;  %v1063_v52 = vadd.f32 1.0, %v2064_v44  ;;  %v2707_v29 = vpop.f32.mrf.mxu0 }
 0x147   :  { %2963 = vst [vmem:[#allocation43_spill] sm:$0xff] %v2707_v29  ;;  %v2709_v53 = vpop.f32.mrf.mxu1  ;;  %v2068_v57 = vpop.eup %2067  ;;  %2093 = vrcp.f32 %v1061_v12  ;;  %v1064_v8 = vadd.f32 1.0, %v2066_v33 }
 0x148   :  { %2964 = vst [vmem:[#allocation44_spill] sm:$0xff] %v2709_v53  ;;  %v2070_v41 = vpop.eup %2069  ;;  %2095 = vrcp.f32 %v1063_v52  ;;  %v1066_v63 = vadd.f32 1.0, %v2068_v57  ;;  %v2711_v51 = vpop.f32.mrf.mxu0  ;;  %v1778_v53 = vmul.f32 -1.442695, %v2609_v56  ;;  %v1229_v57 = vmul.f32 %v2614_v61, %v2529_v22 }
 0x149   :  { %2965 = vst [vmem:[#allocation45_spill] sm:$0xff] %v2711_v51  ;;  %v2713_v19 = vpop.f32.mrf.mxu1  ;;  %v2072_v48 = vpop.eup %2071  ;;  %2097 = vrcp.f32 %v1064_v8  ;;  %v1065_v58 = vadd.f32 1.0, %v2070_v41  ;;  %v1231_v52 = vmul.f32 %v2621_v5, %v2531_v24  ;;  %v1777_v8 = vmul.f32 -1.442695, %v2617_v3 }
 0x14a   :  { %2966 = vst [vmem:[#allocation46_spill] sm:$0xff] %v2713_v19  ;;  %v2716_v44 = vpop.eup %2073  ;;  %2099 = vrcp.f32 %v1066_v63  ;;  %v1067_v9 = vadd.f32 1.0, %v2072_v48  ;;  %v588_v12 = vpop.f32.mrf.mxu0  ;;  %v1228_v48 = vmul.f32 %v2604_v50, %v2523_v2  ;;  %v1230_v63 = vmul.f32 %v2611_v59, %v2525_v7 }
 0x14b   :  { %v749_v33 = vpop.f32.mrf.mxu1  ;;  %v2719_v29 = vpop.eup %2075  ;;  %2101 = vrcp.f32 %v1065_v58  ;;  %v1779_v19 = vmul.f32 -1.442695, %v2619_v4  ;;  %v1780_v24 = vmul.f32 -1.442695, %v2627_v13  ;;  %v1782_v2 = vmul.f32 -1.442695, %v2629_v14 }
 0x14c   :  { %v2726_v41 = vpop.eup %2077  ;;  %2103 = vrcp.f32 %v1067_v9  ;;  %v590_v51 = vpop.f32.mrf.mxu0  ;;  %v1292_v50 = vmul.f32 %v1228_v48, %v588_v12  ;;  %v1294_v55 = vmul.f32 %v1230_v63, %v749_v33  ;;  %v1233_v4 = vmul.f32 %v2634_v20, %v2541_v31 }
 0x14d   :  { %v751_v56 = vpop.f32.mrf.mxu1  ;;  %v2733_v22 = vpop.eup %2079  ;;  %2105 = vpow2.f32 %v1776_v6  ;;  %v1293_v61 = vmul.f32 %v1229_v57, %v590_v51  ;;  %v1235_v6 = vmul.f32 %v2641_v26, %v2543_v32  ;;  %v1232_v51 = vmul.f32 %v2624_v10, %v2535_v27 }
 0x14e   :  { %v1295_v5 = vmul.f32 %v1231_v52, %v751_v56  ;;  %v2736_v58 = vpop.eup %2081  ;;  %2107 = vpow2.f32 %v1778_v53  ;;  %v594_v7 = vpop.f32.mrf.mxu0  ;;  %v1781_v56 = vmul.f32 -1.442695, %v2637_v17  ;;  %v1234_v12 = vmul.f32 %v2631_v18, %v2537_v28 }
 0x14f   :  { %v755_v59 = vpop.f32.mrf.mxu1  ;;  %v2739_v9 = vpop.eup %2083  ;;  %2109 = vpow2.f32 %v1777_v8  ;;  %1484 = vmatprep.mubr.f32.mxu0 %v1293_v61  ;;  %v1783_v33 = vmul.f32 -1.442695, %v2639_v25  ;;  %v1784_v26 = vmul.f32 -1.442695, %v2647_v38  ;;  %v1786_v27 = vmul.f32 -1.442695, %v2649_v40 }
 0x150   :  { %1629 = vmatprep.mubr.f32.mxu1 %v1295_v5  ;;  %v2746_v53 = vpop.eup %2085  ;;  %2111 = vpow2.f32 %v1779_v19  ;;  %v596_v31 = vpop.f32.mrf.mxu0  ;;  %1485 = vmatmul.mubr.f32.vlgmr.msra.gmra.mxu0 %v1292_v50  ;;  %v1296_v28 = vmul.f32 %v1232_v51, %v594_v7  ;;  %v1298_v10 = vmul.f32 %v1234_v12, %v755_v59  ;;  %v1239_v63 = vmul.f32 %v2661_v62, %v2555_v39 }
 0x151   :  { %v757_v20 = vpop.f32.mrf.mxu1  ;;  %1630 = vmatmul.mubr.f32.vlgmr.msra.gmra.mxu1 %v1294_v55  ;;  %v2753_v32 = vpop.eup %2087  ;;  %2113 = vpow2.f32 %v1780_v24  ;;  %v1297_v57 = vmul.f32 %v1233_v4, %v596_v31  ;;  %v1237_v55 = vmul.f32 %v2654_v49, %v2553_v0  ;;  %v1785_v4 = vmul.f32 -1.442695, %v2657_v54 }
 0x152   :  { %v1299_v52 = vmul.f32 %v1235_v6, %v757_v20  ;;  %v2756_v8 = vpop.eup %2089  ;;  %2115 = vpow2.f32 %v1782_v2  ;;  %v600_v18 = vpop.f32.mrf.mxu0  ;;  %v1236_v61 = vmul.f32 %v2644_v34, %v2547_v35  ;;  %v1238_v5 = vmul.f32 %v2651_v45, %v2549_v36 }
 0x153   :  { %v761_v19 = vpop.f32.mrf.mxu1  ;;  %v2759_v48 = vpop.eup %2091  ;;  %2117 = vpow2.f32 %v1781_v56  ;;  %1489 = vmatprep.mubr.f32.mxu0 %v1297_v57  ;;  %v1787_v2 = vmul.f32 -1.442695, %v2659_v60  ;;  %v1788_v62 = vmul.f32 -1.442695, %v2667_v16  ;;  %v1790_v35 = vmul.f32 -1.442695, %v2669_v15 }
 0x154   :  { %1634 = vmatprep.mubr.f32.mxu1 %v1299_v52  ;;  %v2766_v24 = vpop.eup %2093  ;;  %2119 = vpow2.f32 %v1783_v33  ;;  %v602_v0 = vpop.f32.mrf.mxu0  ;;  %1490 = vmatmul.mubr.f32.gmra.mxu0 %v1296_v28  ;;  %v1300_v36 = vmul.f32 %v1236_v61, %v600_v18  ;;  %v1302_v34 = vmul.f32 %v1238_v5, %v761_v19  ;;  %v1241_v51 = vmul.f32 %v2674_v23, %v2565_v46  ;;  %v2970_v61 = vld [vmem:[#allocation15_spill] sm:$0xff] }
 0x155   :  { %v763_v49 = vpop.f32.mrf.mxu1  ;;  %1635 = vmatmul.mubr.f32.gmra.mxu1 %v1298_v10  ;;  %v2773_v39 = vpop.eup %2095  ;;  %2121 = vpow2.f32 %v1784_v26  ;;  %v1301_v50 = vmul.f32 %v1237_v55, %v602_v0  ;;  %v1243_v12 = vmul.f32 %v2681_v37, %v2567_v47  ;;  %v1789_v33 = vmul.f32 -1.442695, %v2677_v30  ;;  %v2967_v37 = vld [vmem:[#allocation31_spill] sm:$0xff] }
 0x156   :  { %v1303_v7 = vmul.f32 %v1239_v63, %v763_v49  ;;  %v2776_v59 = vpop.eup %2097  ;;  %2123 = vpow2.f32 %v1786_v27  ;;  %v606_v45 = vpop.f32.mrf.mxu0  ;;  %v1240_v20 = vmul.f32 %v2664_v11, %v2559_v42  ;;  %v1242_v26 = vmul.f32 %v2671_v21, %v2561_v43  ;;  %v2968_v42 = vld [vmem:[#allocation32_spill] sm:$0xff]  ;;  %v2969_v63 = vld [vmem:[#allocation14_spill] sm:$0xff] }
 0x157   :  { %v767_v6 = vpop.f32.mrf.mxu1  ;;  %v2779_v56 = vpop.eup %2099  ;;  %2125 = vpow2.f32 %v1785_v4  ;;  %1494 = vmatprep.mubr.f32.mxu0 %v1301_v50  ;;  %v1791_v57 = vmul.f32 -1.442695, %v2679_v1  ;;  %v2796_v52 = vmul.f32 -1.442695, %v2967_v37  ;;  %v2799_v11 = vmul.f32 -1.442695, %v2968_v42 }
 0x158   :  { %1639 = vmatprep.mubr.f32.mxu1 %v1303_v7  ;;  %v2786_v31 = vpop.eup %2101  ;;  %2127 = vpow2.f32 %v1787_v2  ;;  %v608_v46 = vpop.f32.mrf.mxu0  ;;  %1495 = vmatmul.mubr.f32.gmra.mxu0 %v1300_v36  ;;  %v1304_v43 = vmul.f32 %v1240_v20, %v606_v45  ;;  %v1306_v21 = vmul.f32 %v1242_v26, %v767_v6  ;;  %v1245_v4 = vmul.f32 %v2726_v41, %v2969_v63  ;;  %v2971_v49 = vld [vmem:[#allocation12_spill] sm:$0xff]  ;;  %v2972_v50 = vld [vmem:[#allocation13_spill] sm:$0xff] }
 0x159   :  { %v769_v23 = vpop.f32.mrf.mxu1  ;;  %1640 = vmatmul.mubr.f32.gmra.mxu1 %v1302_v34  ;;  %v2793_v47 = vpop.eup %2103  ;;  %2129 = vpow2.f32 %v1788_v62  ;;  %v1305_v27 = vmul.f32 %v1241_v51, %v608_v46  ;;  %v1247_v5 = vmul.f32 %v2733_v22, %v2970_v61  ;;  %v1244_v62 = vmul.f32 %v2716_v44, %v2971_v49 }
 0x15a   :  { %v1307_v28 = vmul.f32 %v1243_v12, %v769_v23  ;;  %v2106_v10 = vpop.eup %2105  ;;  %2131 = vpow2.f32 %v1790_v35  ;;  %v612_v18 = vpop.f32.mrf.mxu0  ;;  %v1246_v7 = vmul.f32 %v2719_v29, %v2972_v50  ;;  %v2973_v29 = vld [vmem:[#allocation18_spill] sm:$0xff]  ;;  %v2974_v23 = vld [vmem:[#allocation19_spill] sm:$0xff] }
 0x15b   :  { %v773_v19 = vpop.f32.mrf.mxu1  ;;  %v2108_v55 = vpop.eup %2107  ;;  %v1068_v2 = vadd.f32 1.0, %v2106_v10  ;;  %2133 = vpow2.f32 %v1789_v33  ;;  %1499 = vmatprep.mubr.f32.mxu0 %v1305_v27  ;;  %v1308_v33 = vmul.f32 %v1244_v62, %v612_v18  ;;  %v1251_v27 = vmul.f32 %v2753_v32, %v2974_v23 }
 0x15c   :  { %1644 = vmatprep.mubr.f32.mxu1 %v1307_v28  ;;  %v2110_v0 = vpop.eup %2109  ;;  %v1070_v35 = vadd.f32 1.0, %v2108_v55  ;;  %2135 = vpow2.f32 %v1791_v57  ;;  %v614_v36 = vpop.f32.mrf.mxu0  ;;  %1500 = vmatmul.mubr.f32.gmra.mxu0 %v1304_v43  ;;  %v1310_v20 = vmul.f32 %v1246_v7, %v773_v19  ;;  %v1249_v57 = vmul.f32 %v2746_v53, %v2973_v29  ;;  %v2975_v43 = vld [vmem:[#allocation16_spill] sm:$0xff]  ;;  %v2976_v55 = vld [vmem:[#allocation17_spill] sm:$0xff] }
 0x15d   :  { %v775_v34 = vpop.f32.mrf.mxu1  ;;  %1645 = vmatmul.mubr.f32.gmra.mxu1 %v1306_v21  ;;  %v2112_v41 = vpop.eup %2111  ;;  %2137 = vrcp.f32 %v1068_v2  ;;  %v1069_v22 = vadd.f32 1.0, %v2110_v0  ;;  %v1309_v45 = vmul.f32 %v1245_v4, %v614_v36  ;;  %v1248_v21 = vmul.f32 %v2736_v58, %v2975_v43  ;;  %v2978_v36 = vld [vmem:[#allocation23_spill] sm:$0xff] }
 0x15e   :  { %v1311_v6 = vmul.f32 %v1247_v5, %v775_v34  ;;  %v2114_v51 = vpop.eup %2113  ;;  %2139 = vrcp.f32 %v1070_v35  ;;  %v1071_v12 = vadd.f32 1.0, %v2112_v41  ;;  %v618_v44 = vpop.f32.mrf.mxu0  ;;  %v1250_v18 = vmul.f32 %v2739_v9, %v2976_v55  ;;  %v2977_v9 = vld [vmem:[#allocation22_spill] sm:$0xff] }
 0x15f   :  { %v779_v26 = vpop.f32.mrf.mxu1  ;;  %v2116_v46 = vpop.eup %2115  ;;  %2141 = vrcp.f32 %v1069_v22  ;;  %v1072_v28 = vadd.f32 1.0, %v2114_v51  ;;  %1504 = vmatprep.mubr.f32.mxu0 %v1309_v45  ;;  %v1312_v49 = vmul.f32 %v1248_v21, %v618_v44  ;;  %v1253_v35 = vmul.f32 %v2766_v24, %v2977_v9  ;;  %v2979_v45 = vld [vmem:[#allocation20_spill] sm:$0xff]  ;;  %v2980_v51 = vld [vmem:[#allocation21_spill] sm:$0xff]  ;;  %v2982_v21 = vld [vmem:[#allocation27_spill] sm:$0xff] }
 0x160   :  { %1649 = vmatprep.mubr.f32.mxu1 %v1311_v6  ;;  %v2118_v10 = vpop.eup %2117  ;;  %2143 = vrcp.f32 %v1071_v12  ;;  %v1074_v19 = vadd.f32 1.0, %v2116_v46  ;;  %v620_v63 = vpop.f32.mrf.mxu0  ;;  %1505 = vmatmul.mubr.f32.gmra.mxu0 %v1308_v33  ;;  %v1314_v62 = vmul.f32 %v1250_v18, %v779_v26  ;;  %v1255_v34 = vmul.f32 %v2773_v39, %v2978_v36 }
 0x161   :  { %v781_v4 = vpop.f32.mrf.mxu1  ;;  %1650 = vmatmul.mubr.f32.gmra.mxu1 %v1310_v20  ;;  %v2120_v53 = vpop.eup %2119  ;;  %2145 = vrcp.f32 %v1072_v28  ;;  %v1073_v32 = vadd.f32 1.0, %v2118_v10  ;;  %v1313_v61 = vmul.f32 %v1249_v57, %v620_v63  ;;  %v1252_v6 = vmul.f32 %v2756_v8, %v2979_v45  ;;  %v2983_v63 = vld [vmem:[#allocation24_spill] sm:$0xff] }
 0x162   :  { %v1315_v5 = vmul.f32 %v1251_v27, %v781_v4  ;;  %v2122_v2 = vpop.eup %2121  ;;  %2147 = vrcp.f32 %v1074_v19  ;;  %v1075_v0 = vadd.f32 1.0, %v2120_v53  ;;  %v624_v58 = vpop.f32.mrf.mxu0  ;;  %v1254_v12 = vmul.f32 %v2759_v48, %v2980_v51  ;;  %v2981_v48 = vld [vmem:[#allocation26_spill] sm:$0xff]  ;;  %v2984_v53 = vld [vmem:[#allocation25_spill] sm:$0xff] }
 0x163   :  { %v785_v50 = vpop.f32.mrf.mxu1  ;;  %v2124_v7 = vpop.eup %2123  ;;  %2149 = vrcp.f32 %v1073_v32  ;;  %v1076_v41 = vadd.f32 1.0, %v2122_v2  ;;  %1509 = vmatprep.mubr.f32.mxu0 %v1313_v61  ;;  %v1316_v23 = vmul.f32 %v1252_v6, %v624_v58  ;;  %v1257_v43 = vmul.f32 %v2786_v31, %v2981_v48 }
 0x164   :  { %1654 = vmatprep.mubr.f32.mxu1 %v1315_v5  ;;  %v2126_v22 = vpop.eup %2125  ;;  %2151 = vrcp.f32 %v1075_v0  ;;  %v1078_v33 = vadd.f32 1.0, %v2124_v7  ;;  %v626_v20 = vpop.f32.mrf.mxu0  ;;  %1510 = vmatmul.mubr.f32.gmra.mxu0 %v1312_v49  ;;  %v1318_v27 = vmul.f32 %v1254_v12, %v785_v50  ;;  %v1259_v55 = vmul.f32 %v2793_v47, %v2982_v21  ;;  %v2993_v21 = vld [vmem:[#allocation38_spill] sm:$0xff] }
 0x165   :  { %v787_v44 = vpop.f32.mrf.mxu1  ;;  %1655 = vmatmul.mubr.f32.gmra.mxu1 %v1314_v62  ;;  %v2128_v24 = vpop.eup %2127  ;;  %2153 = vrcp.f32 %v1076_v41  ;;  %v1077_v39 = vadd.f32 1.0, %v2126_v22  ;;  %v1317_v26 = vmul.f32 %v1253_v35, %v626_v20  ;;  %v1256_v4 = vmul.f32 %v2776_v59, %v2983_v63  ;;  %v2986_v41 = vld [vmem:[#allocation34_spill] sm:$0xff] }
 0x166   :  { %v1319_v46 = vmul.f32 %v1255_v34, %v787_v44  ;;  %v2130_v29 = vpop.eup %2129  ;;  %2155 = vrcp.f32 %v1078_v33  ;;  %v1079_v57 = vadd.f32 1.0, %v2128_v24  ;;  %v630_v8 = vpop.f32.mrf.mxu0  ;;  %v1258_v32 = vmul.f32 %v2779_v56, %v2984_v53  ;;  %v2985_v56 = vld [vmem:[#allocation33_spill] sm:$0xff]  ;;  %v2987_v33 = vld [vmem:[#allocation35_spill] sm:$0xff]  ;;  %v2988_v24 = vld [vmem:[#allocation28_spill] sm:$0xff] }
 0x167   :  { %v791_v28 = vpop.f32.mrf.mxu1  ;;  %v2132_v10 = vpop.eup %2131  ;;  %2157 = vrcp.f32 %v1077_v39  ;;  %v1080_v18 = vadd.f32 1.0, %v2130_v29  ;;  %1514 = vmatprep.mubr.f32.mxu0 %v1317_v26  ;;  %v1320_v50 = vmul.f32 %v1256_v4, %v630_v8  ;;  %v1793_v36 = vmul.f32 -1.442695, %v2985_v56  ;;  %v2989_v26 = vld [vmem:[#allocation30_spill] sm:$0xff]  ;;  %v2990_v29 = vld [vmem:[#allocation36_spill] sm:$0xff] }
 0x168   :  { %1659 = vmatprep.mubr.f32.mxu1 %v1319_v46  ;;  %v2134_v19 = vpop.eup %2133  ;;  %2159 = vrcp.f32 %v1079_v57  ;;  %v1082_v61 = vadd.f32 1.0, %v2132_v10  ;;  %v632_v5 = vpop.f32.mrf.mxu0  ;;  %1515 = vmatmul.mubr.f32.gmra.mxu0 %v1316_v23  ;;  %v1322_v7 = vmul.f32 %v1258_v32, %v791_v28  ;;  %v1795_v22 = vmul.f32 -1.442695, %v2986_v41  ;;  %v2991_v28 = vld [vmem:[#allocation29_spill] sm:$0xff]  ;;  %v2994_v32 = vld [vmem:[#allocation39_spill] sm:$0xff] }
 0x169   :  { %v793_v2 = vpop.f32.mrf.mxu1  ;;  %1660 = vmatmul.mubr.f32.gmra.mxu1 %v1318_v27  ;;  %v2136_v31 = vpop.eup %2135  ;;  %2161 = vrcp.f32 %v1080_v18  ;;  %v1081_v47 = vadd.f32 1.0, %v2134_v19  ;;  %v1321_v0 = vmul.f32 %v1257_v43, %v632_v5  ;;  %v1796_v20 = vmul.f32 -1.442695, %v2987_v33 }
 0x16a   :  { %v1323_v49 = vmul.f32 %v1259_v55, %v793_v2  ;;  %v2138_v62 = vpop.eup %2137  ;;  %2163 = vrcp.f32 %v1082_v61  ;;  %v1083_v58 = vadd.f32 1.0, %v2136_v31  ;;  %v636_v59 = vpop.f32.mrf.mxu0  ;;  %v1798_v57 = vmul.f32 -1.442695, %v2990_v29 }
 0x16b   :  { %v797_v9 = vpop.f32.mrf.mxu1  ;;  %v2140_v35 = vpop.eup %2139  ;;  %2165 = vrcp.f32 %v1081_v47  ;;  %1519 = vmatprep.mubr.f32.mxu0 %v1321_v0  ;;  %v1260_v39 = vmul.f32 %v2138_v62, %v2988_v24  ;;  %v1799_v55 = vmul.f32 -1.442695, %v2993_v21  ;;  %v1800_v61 = vmul.f32 -1.442695, %v2994_v32  ;;  %v2995_v0 = vld [vmem:[#allocation40_spill] sm:$0xff] }
 0x16c   :  { %1664 = vmatprep.mubr.f32.mxu1 %v1323_v49  ;;  %v2142_v34 = vpop.eup %2141  ;;  %2167 = vrcp.f32 %v1083_v58  ;;  %v638_v45 = vpop.f32.mrf.mxu0  ;;  %1520 = vmatmul.mubr.f32.gmra.mxu0 %v1320_v50  ;;  %v1262_v10 = vmul.f32 %v2140_v35, %v2991_v28  ;;  %v1802_v49 = vmul.f32 -1.442695, %v2995_v0  ;;  %v3000_v28 = vld [vmem:[#allocation45_spill] sm:$0xff] }
 0x16d   :  { %v799_v6 = vpop.f32.mrf.mxu1  ;;  %1665 = vmatmul.mubr.f32.gmra.mxu1 %v1322_v7  ;;  %v2144_v51 = vpop.eup %2143  ;;  %v1261_v12 = vmul.f32 %v2142_v34, %v2617_v3  ;;  %2169 = vpow2.f32 %v2796_v52  ;;  %v2992_v3 = vld [vmem:[#allocation37_spill] sm:$0xff]  ;;  %v1324_v18 = vmul.f32 %v1260_v39, %v636_v59 }
 0x16e   :  { %v2146_v44 = vpop.eup %2145  ;;  %v1263_v46 = vmul.f32 %v2144_v51, %v2989_v26  ;;  %2171 = vpow2.f32 %v2799_v11  ;;  %v642_v23 = vpop.f32.mrf.mxu0  ;;  %v1797_v48 = vmul.f32 -1.442695, %v2992_v3  ;;  %v1326_v5 = vmul.f32 %v1262_v10, %v797_v9  ;;  %v2996_v7 = vld [vmem:[#allocation41_spill] sm:$0xff]  ;;  %v2999_v26 = vld [vmem:[#allocation44_spill] sm:$0xff] }
 0x16f   :  { %v803_v27 = vpop.f32.mrf.mxu1  ;;  %v2148_v8 = vpop.eup %2147  ;;  %2173 = vpow2.f32 %v1793_v36  ;;  %v1325_v52 = vmul.f32 %v1261_v12, %v638_v45  ;;  %v1264_v31 = vmul.f32 %v2146_v44, %v2627_v13  ;;  %v1801_v59 = vmul.f32 -1.442695, %v2996_v7  ;;  %v2997_v13 = vld [vmem:[#allocation42_spill] sm:$0xff]  ;;  %v2998_v12 = vld [vmem:[#allocation43_spill] sm:$0xff] }
 0x170   :  { %v2150_v43 = vpop.eup %2149  ;;  %2175 = vpow2.f32 %v1795_v22  ;;  %v1327_v19 = vmul.f32 %v1263_v46, %v799_v6  ;;  %v644_v63 = vpop.f32.mrf.mxu0  ;;  %v1803_v36 = vmul.f32 -1.442695, %v2997_v13  ;;  %v1806_v46 = vmul.f32 -1.442695, %v2999_v26 }
 0x171   :  { %v805_v4 = vpop.f32.mrf.mxu1  ;;  %v2152_v11 = vpop.eup %2151  ;;  %v1265_v53 = vmul.f32 %v2150_v43, %v2637_v17  ;;  %2177 = vpow2.f32 %v1796_v20  ;;  %1524 = vmatprep.mubr.f32.mxu0 %v1325_v52  ;;  %v1266_v17 = vmul.f32 %v2148_v8, %v2629_v14  ;;  %v1804_v20 = vmul.f32 -1.442695, %v2998_v12 }
 0x172   :  { %v2154_v2 = vpop.eup %2153  ;;  %v1267_v47 = vmul.f32 %v2152_v11, %v2639_v25  ;;  %2179 = vpow2.f32 %v1798_v57  ;;  %1669 = vmatprep.mubr.f32.mxu1 %v1327_v19  ;;  %1525 = vmatmul.mubr.f32.gmra.mxu0 %v1324_v18  ;;  %v648_v62 = vpop.f32.mrf.mxu0  ;;  %v1328_v25 = vmul.f32 %v1264_v31, %v642_v23  ;;  %v1805_v10 = vmul.f32 -1.442695, %v3000_v28 }
 0x173   :  { %v809_v58 = vpop.f32.mrf.mxu1  ;;  %v2156_v50 = vpop.eup %2155  ;;  %2181 = vpow2.f32 %v1797_v48  ;;  %v1329_v9 = vmul.f32 %v1265_v53, %v644_v63  ;;  %1670 = vmatmul.mubr.f32.gmra.mxu1 %v1326_v5  ;;  %v1330_v14 = vmul.f32 %v1266_v17, %v803_v27  ;;  %v1268_v24 = vmul.f32 %v2154_v2, %v2647_v38  ;;  %v3001_v38 = vld [vmem:[#allocation46_spill] sm:$0xff] }
 0x174   :  { %v2158_v35 = vpop.eup %2157  ;;  %2183 = vpow2.f32 %v1799_v55  ;;  %v1331_v34 = vmul.f32 %v1267_v47, %v805_v4  ;;  %v650_v22 = vpop.f32.mrf.mxu0  ;;  %v1807_v52 = vmul.f32 -1.442695, %v3001_v38 }
 0x175   :  { %v811_v45 = vpop.f32.mrf.mxu1  ;;  %v2160_v6 = vpop.eup %2159  ;;  %v1269_v51 = vmul.f32 %v2158_v35, %v2657_v54  ;;  %2185 = vpow2.f32 %v1800_v61  ;;  %1529 = vmatprep.mubr.f32.mxu0 %v1329_v9  ;;  %v1270_v54 = vmul.f32 %v2156_v50, %v2649_v40 }
 0x176   :  { %v2162_v44 = vpop.eup %2161  ;;  %v1271_v39 = vmul.f32 %v2160_v6, %v2659_v60  ;;  %2187 = vpow2.f32 %v1802_v49  ;;  %1674 = vmatprep.mubr.f32.mxu1 %v1331_v34  ;;  %1530 = vmatmul.mubr.f32.gmra.mxu0 %v1328_v25  ;;  %v654_v57 = vpop.f32.mrf.mxu0  ;;  %v1332_v60 = vmul.f32 %v1268_v24, %v648_v62 }
 0x177   :  { %v815_v23 = vpop.f32.mrf.mxu1  ;;  %v2164_v8 = vpop.eup %2163  ;;  %2189 = vpow2.f32 %v1801_v59  ;;  %v1333_v27 = vmul.f32 %v1269_v51, %v650_v22  ;;  %1675 = vmatmul.mubr.f32.gmra.mxu1 %v1330_v14  ;;  %v1334_v63 = vmul.f32 %v1270_v54, %v809_v58  ;;  %v1272_v11 = vmul.f32 %v2162_v44, %v2667_v16 }
 0x178   :  { %v2166_v48 = vpop.eup %2165  ;;  %2191 = vpow2.f32 %v1803_v36  ;;  %v1335_v43 = vmul.f32 %v1271_v39, %v811_v45  ;;  %v656_v55 = vpop.f32.mrf.mxu0  ;;  %v1274_v5 = vmul.f32 %v2164_v8, %v2669_v15 }
 0x179   :  { %v2168_v18 = vpop.eup %2167  ;;  %v1273_v19 = vmul.f32 %v2166_v48, %v2677_v30  ;;  %2193 = vpow2.f32 %v1804_v20  ;;  %1534 = vmatprep.mubr.f32.mxu0 %v1333_v27  ;;  %v817_v4 = vpop.f32.mrf.mxu1  ;;  %v1336_v49 = vmul.f32 %v1272_v11, %v654_v57 }
 0x17a   :  { %v2170_v40 = vpop.eup %2169  ;;  %v1275_v53 = vmul.f32 %v2168_v18, %v2679_v1  ;;  %2195 = vpow2.f32 %v1806_v46  ;;  %1679 = vmatprep.mubr.f32.mxu1 %v1335_v43  ;;  %1535 = vmatmul.mubr.f32.gmra.mxu0 %v1332_v60  ;;  %v2865_v58 = vpop.f32.mrf.mxu0  ;;  %v1338_v50 = vmul.f32 %v1274_v5, %v815_v23 }
 0x17b   :  { %v2172_v61 = vpop.eup %2171  ;;  %v1084_v2 = vadd.f32 1.0, %v2170_v40  ;;  %2197 = vpow2.f32 %v1805_v10  ;;  %v1337_v31 = vmul.f32 %v1273_v19, %v656_v55  ;;  %1680 = vmatmul.mubr.f32.gmra.mxu1 %v1334_v63  ;;  %v2867_v17 = vpop.f32.mrf.mxu1 }
 0x17c   :  { %v2174_v30 = vpop.eup %2173  ;;  %v1086_v47 = vadd.f32 1.0, %v2172_v61  ;;  %2199 = vpow2.f32 %v1807_v52  ;;  %v1339_v62 = vmul.f32 %v1275_v53, %v817_v4  ;;  %v662_v34 = vpop.f32.mrf.mxu0 }
 0x17d   :  { %v2176_v16 = vpop.eup %2175  ;;  %2201 = vrcp.f32 %v1084_v2  ;;  %v1085_v1 = vadd.f32 1.0, %v2174_v30  ;;  %1539 = vmatprep.mubr.f32.mxu0 %v1337_v31  ;;  %v823_v6 = vpop.f32.mrf.mxu1 }
 0x17e   :  { %v2178_v59 = vpop.eup %2177  ;;  %2203 = vrcp.f32 %v1086_v47  ;;  %v1087_v15 = vadd.f32 1.0, %v2176_v16  ;;  %1684 = vmatprep.mubr.f32.mxu1 %v1339_v62  ;;  %1540 = vmatmul.mubr.f32.gmra.mxu0 %v1336_v49  ;;  %v666_v46 = vpop.f32.mrf.mxu0 }
 0x17f   :  { %v2180_v9 = vpop.eup %2179  ;;  %2205 = vrcp.f32 %v1085_v1  ;;  %v1088_v35 = vadd.f32 1.0, %v2178_v59  ;;  %1685 = vmatmul.mubr.f32.gmra.mxu1 %v1338_v50  ;;  %v827_v8 = vpop.f32.mrf.mxu1 }
 0x180   :  { %v2182_v36 = vpop.eup %2181  ;;  %2207 = vrcp.f32 %v1087_v15  ;;  %v1090_v25 = vadd.f32 1.0, %v2180_v9  ;;  %v668_v43 = vpop.f32.mrf.mxu0 }
 0x181   :  { %v2184_v22 = vpop.eup %2183  ;;  %2209 = vrcp.f32 %v1088_v35  ;;  %v1089_v45 = vadd.f32 1.0, %v2182_v36  ;;  %v829_v19 = vpop.f32.mrf.mxu1 }
 0x182   :  { %v2186_v51 = vpop.eup %2185  ;;  %2211 = vrcp.f32 %v1090_v25  ;;  %v1091_v20 = vadd.f32 1.0, %v2184_v22  ;;  %v672_v53 = vpop.f32.mrf.mxu0 }
 0x183   :  { %v2188_v14 = vpop.eup %2187  ;;  %2213 = vrcp.f32 %v1089_v45  ;;  %v1092_v44 = vadd.f32 1.0, %v2186_v51  ;;  %v833_v2 = vpop.f32.mrf.mxu1 }
 0x184   :  { %v2190_v24 = vpop.eup %2189  ;;  %2215 = vrcp.f32 %v1091_v20  ;;  %v1094_v39 = vadd.f32 1.0, %v2188_v14  ;;  %v674_v15 = vpop.f32.mrf.mxu0 }
 0x185   :  { %v2192_v57 = vpop.eup %2191  ;;  %2217 = vrcp.f32 %v1092_v44  ;;  %v1093_v23 = vadd.f32 1.0, %v2190_v24  ;;  %v835_v36 = vpop.f32.mrf.mxu1 }
 0x186   :  { %v2194_v54 = vpop.eup %2193  ;;  %2219 = vrcp.f32 %v1094_v39  ;;  %v1095_v10 = vadd.f32 1.0, %v2192_v57 }
 0x187   :  { %v2196_v27 = vpop.eup %2195  ;;  %2221 = vrcp.f32 %v1093_v23  ;;  %v1096_v48 = vadd.f32 1.0, %v2194_v54  ;;  %v839_v14 = vpop.f32.mrf.mxu1 }
 0x188   :  { %v2198_v52 = vpop.eup %2197  ;;  %2223 = vrcp.f32 %v1095_v10  ;;  %v1098_v60 = vadd.f32 1.0, %v2196_v27 }
 0x189   :  { %v2200_v55 = vpop.eup %2199  ;;  %2225 = vrcp.f32 %v1096_v48  ;;  %v1097_v18 = vadd.f32 1.0, %v2198_v52  ;;  %v841_v27 = vpop.f32.mrf.mxu1 }
 0x18a   :  { %v2202_v63 = vpop.eup %2201  ;;  %2227 = vrcp.f32 %v1098_v60  ;;  %v1099_v4 = vadd.f32 1.0, %v2200_v55 }
 0x18b   :  { %v2204_v40 = vpop.eup %2203  ;;  %2229 = vrcp.f32 %v1097_v18  ;;  %v1276_v30 = vmul.f32 %v2202_v63, %v2967_v37 }
 0x18c   :  { %v2206_v11 = vpop.eup %2205  ;;  %2231 = vrcp.f32 %v1099_v4  ;;  %v1278_v62 = vmul.f32 %v2204_v40, %v2968_v42 }
 0x18d   :  { %v2208_v61 = vpop.eup %2207  ;;  %v1277_v5 = vmul.f32 %v2206_v11, %v2985_v56  ;;  %v1340_v50 = vmul.f32 %v1276_v30, %v2865_v58 }
 0x18e   :  { %v2210_v31 = vpop.eup %2209  ;;  %v1279_v47 = vmul.f32 %v2208_v61, %v2986_v41  ;;  %v1342_v56 = vmul.f32 %v1278_v62, %v2867_v17 }
 0x18f   :  { %v2212_v49 = vpop.eup %2211  ;;  %v1341_v16 = vmul.f32 %v1277_v5, %v662_v34  ;;  %v1280_v37 = vmul.f32 %v2210_v31, %v2987_v33 }
 0x190   :  { %v2214_v1 = vpop.eup %2213  ;;  %v1343_v59 = vmul.f32 %v1279_v47, %v823_v6  ;;  %v1282_v34 = vmul.f32 %v2212_v49, %v2990_v29 }
 0x191   :  { %v2216_v9 = vpop.eup %2215  ;;  %v1281_v35 = vmul.f32 %v2214_v1, %v2992_v3  ;;  %1544 = vmatprep.mubr.f32.mxu0 %v1341_v16  ;;  %v1344_v45 = vmul.f32 %v1280_v37, %v666_v46  ;;  %v678_v3 = vpop.f32.mrf.mxu0 }
 0x192   :  { %v2218_v25 = vpop.eup %2217  ;;  %v1283_v41 = vmul.f32 %v2216_v9, %v2993_v21  ;;  %1689 = vmatprep.mubr.f32.mxu1 %v1343_v59  ;;  %1545 = vmatmul.mubr.f32.gmra.mxu0 %v1340_v50  ;;  %v1346_v20 = vmul.f32 %v1282_v34, %v827_v8 }
 0x193   :  { %v2220_v42 = vpop.eup %2219  ;;  %v1345_v58 = vmul.f32 %v1281_v35, %v668_v43  ;;  %1690 = vmatmul.mubr.f32.gmra.mxu1 %v1342_v56  ;;  %v1284_v21 = vmul.f32 %v2218_v25, %v2994_v32  ;;  %v680_v54 = vpop.f32.mrf.mxu0 }
 0x194   :  { %v2222_v22 = vpop.eup %2221  ;;  %v1347_v6 = vmul.f32 %v1283_v41, %v829_v19  ;;  %v1286_v24 = vmul.f32 %v2220_v42, %v2995_v0 }
 0x195   :  { %v2224_v51 = vpop.eup %2223  ;;  %v1285_v17 = vmul.f32 %v2222_v22, %v2996_v7  ;;  %1549 = vmatprep.mubr.f32.mxu0 %v1345_v58  ;;  %v1348_v57 = vmul.f32 %v1284_v21, %v672_v53 }
 0x196   :  { %v2226_v33 = vpop.eup %2225  ;;  %v1287_v44 = vmul.f32 %v2224_v51, %v2997_v13  ;;  %1694 = vmatprep.mubr.f32.mxu1 %v1347_v6  ;;  %1550 = vmatmul.mubr.f32.gmra.mxu0 %v1344_v45  ;;  %v1350_v10 = vmul.f32 %v1286_v24, %v833_v2 }
 0x197   :  { %v2228_v29 = vpop.eup %2227  ;;  %v1349_v39 = vmul.f32 %v1285_v17, %v674_v15  ;;  %1695 = vmatmul.mubr.f32.gmra.mxu1 %v1346_v20  ;;  %v1288_v32 = vmul.f32 %v2226_v33, %v2998_v12 }
 0x198   :  { %v2230_v46 = vpop.eup %2229  ;;  %v1351_v23 = vmul.f32 %v1287_v44, %v835_v36  ;;  %v1290_v0 = vmul.f32 %v2228_v29, %v2999_v26 }
 0x199   :  { %v2232_v7 = vpop.eup %2231  ;;  %v1289_v8 = vmul.f32 %v2230_v46, %v3000_v28  ;;  %1554 = vmatprep.mubr.f32.mxu0 %v1349_v39  ;;  %v1352_v52 = vmul.f32 %v1288_v32, %v678_v3 }
 0x19a   :  { %v1291_v13 = vmul.f32 %v2232_v7, %v3001_v38  ;;  %1699 = vmatprep.mubr.f32.mxu1 %v1351_v23  ;;  %1555 = vmatmul.mubr.f32.gmra.mxu0 %v1348_v57  ;;  %v1354_v43 = vmul.f32 %v1290_v0, %v839_v14 }
 0x19b   :  { %v1353_v48 = vmul.f32 %v1289_v8, %v680_v54  ;;  %1700 = vmatmul.mubr.f32.gmra.mxu1 %v1350_v10 }
 0x19c   :  { %v1355_v60 = vmul.f32 %v1291_v13, %v841_v27 }
 0x19d   :  { %1559 = vmatprep.mubr.f32.mxu0 %v1353_v48 }
 0x19e   :  { %1704 = vmatprep.mubr.f32.mxu1 %v1355_v60  ;;  %1560 = vmatmul.mubr.f32.gmra.mxu0 %v1352_v52 }
 0x19f   :  { %1705 = vmatmul.mubr.f32.gmra.mxu1 %v1354_v43 }
 0x210   :  { %v1840_v28 = vpop.f32.mrf.mxu0 }
 0x211   :  { %v1920_v55 = vpop.f32.mrf.mxu1 }
 0x212   :  { %v1841_v18 = vpop.f32.mrf.mxu0 }
 0x213   :  { %v1921_v19 = vpop.f32.mrf.mxu1  ;;  %v1842_v12 = vadd.f32 %v1841_v18, %v1840_v28 }
 0x214   :  { %v1922_v63 = vadd.f32 %v1921_v19, %v1920_v55  ;;  %v1843_v38 = vpop.f32.mrf.mxu0 }
 0x215   :  { %v1923_v4 = vpop.f32.mrf.mxu1 }
 0x216   :  { %v1632_v40 = vadd.f32 %v1922_v63, %v1842_v12  ;;  %v1844_v11 = vpop.f32.mrf.mxu0 }
 0x217   :  { %v1924_v26 = vpop.f32.mrf.mxu1  ;;  %v1845_v53 = vadd.f32 %v1844_v11, %v1843_v38 }
 0x218   :  { %1710 = vst [vmem:[#allocation8] sm:$0xff] %v1632_v40  ;;  %v1925_v61 = vadd.f32 %v1924_v26, %v1923_v4  ;;  %v1846_v5 = vpop.f32.mrf.mxu0 }
 0x219   :  { %v1926_v2 = vpop.f32.mrf.mxu1 }
 0x21a   :  { %v1637_v31 = vadd.f32 %v1925_v61, %v1845_v53  ;;  %v1847_v30 = vpop.f32.mrf.mxu0 }
 0x21b   :  { %v1927_v47 = vpop.f32.mrf.mxu1  ;;  %v1848_v49 = vadd.f32 %v1847_v30, %v1846_v5 }
 0x21c   :  { %1711 = vst [vmem:[#allocation8 + $0x8] sm:$0xff] %v1637_v31  ;;  %v1928_v62 = vadd.f32 %v1927_v47, %v1926_v2  ;;  %v1849_v16 = vpop.f32.mrf.mxu0 }
 0x21d   :  { %v1929_v1 = vpop.f32.mrf.mxu1 }
 0x21e   :  { %v1642_v50 = vadd.f32 %v1928_v62, %v1848_v49  ;;  %v1850_v59 = vpop.f32.mrf.mxu0 }
 0x21f   :  { %v1930_v15 = vpop.f32.mrf.mxu1  ;;  %v1851_v9 = vadd.f32 %v1850_v59, %v1849_v16 }
 0x220   :  { %1712 = vst [vmem:[#allocation8 + $0x10] sm:$0xff] %v1642_v50  ;;  %v1931_v35 = vadd.f32 %v1930_v15, %v1929_v1  ;;  %v1852_v56 = vpop.f32.mrf.mxu0 }
 0x221   :  { %v1932_v36 = vpop.f32.mrf.mxu1 }
 0x222   :  { %v1647_v25 = vadd.f32 %v1931_v35, %v1851_v9  ;;  %v1853_v37 = vpop.f32.mrf.mxu0 }
 0x223   :  { %v1933_v41 = vpop.f32.mrf.mxu1  ;;  %v1854_v42 = vadd.f32 %v1853_v37, %v1852_v56 }
 0x224   :  { %1713 = vst [vmem:[#allocation8 + $0x18] sm:$0xff] %v1647_v25  ;;  %v1934_v34 = vadd.f32 %v1933_v41, %v1932_v36  ;;  %v1855_v58 = vpop.f32.mrf.mxu0 }
 0x225   :  { %v1935_v22 = vpop.f32.mrf.mxu1 }
 0x226   :  { %v1652_v45 = vadd.f32 %v1934_v34, %v1854_v42  ;;  %v1856_v6 = vpop.f32.mrf.mxu0 }
 0x227   :  { %v1936_v3 = vpop.f32.mrf.mxu1  ;;  %v1857_v51 = vadd.f32 %v1856_v6, %v1855_v58 }
 0x228   :  { %1714 = vst [vmem:[#allocation8 + $0x20] sm:$0xff] %v1652_v45  ;;  %v1937_v17 = vadd.f32 %v1936_v3, %v1935_v22  ;;  %v1858_v20 = vpop.f32.mrf.mxu0 }
 0x229   :  { %v1938_v14 = vpop.f32.mrf.mxu1 }
 0x22a   :  { %v1657_v33 = vadd.f32 %v1937_v17, %v1857_v51  ;;  %v1859_v21 = vpop.f32.mrf.mxu0 }
 0x22b   :  { %v1939_v44 = vpop.f32.mrf.mxu1  ;;  %v1860_v29 = vadd.f32 %v1859_v21, %v1858_v20 }
 0x22c   :  { %1715 = vst [vmem:[#allocation8 + $0x28] sm:$0xff] %v1657_v33  ;;  %v1940_v24 = vadd.f32 %v1939_v44, %v1938_v14  ;;  %v1861_v39 = vpop.f32.mrf.mxu0 }
 0x22d   :  { %v1941_v46 = vpop.f32.mrf.mxu1 }
 0x22e   :  { %v1662_v57 = vadd.f32 %v1940_v24, %v1860_v29  ;;  %v1862_v23 = vpop.f32.mrf.mxu0 }
 0x22f   :  { %v1942_v54 = vpop.f32.mrf.mxu1  ;;  %v1863_v7 = vadd.f32 %v1862_v23, %v1861_v39 }
 0x230   :  { %1716 = vst [vmem:[#allocation8 + $0x30] sm:$0xff] %v1662_v57  ;;  %v1943_v8 = vadd.f32 %v1942_v54, %v1941_v46 }
 0x232   :  { %v1667_v10 = vadd.f32 %v1943_v8, %v1863_v7  ;;  %v1864_v27 = vpop.f32.mrf.mxu0 }
 0x233   :  { %v1944_v32 = vpop.f32.mrf.mxu1 }
 0x234   :  { %1717 = vst [vmem:[#allocation8 + $0x38] sm:$0xff] %v1667_v10  ;;  %v1865_v13 = vpop.f32.mrf.mxu0 }
 0x235   :  { %v1866_v0 = vadd.f32 %v1865_v13, %v1864_v27  ;;  %v1945_v48 = vpop.f32.mrf.mxu1 }
 0x236   :  { %v1946_v52 = vadd.f32 %v1945_v48, %v1944_v32  ;;  %v1867_v60 = vpop.f32.mrf.mxu0 }
 0x237   :  { %v1947_v43 = vpop.f32.mrf.mxu1 }
 0x238   :  { %v1672_v28 = vadd.f32 %v1946_v52, %v1866_v0  ;;  %v1868_v55 = vpop.f32.mrf.mxu0 }
 0x239   :  { %v1869_v18 = vadd.f32 %v1868_v55, %v1867_v60  ;;  %v1948_v19 = vpop.f32.mrf.mxu1 }
 0x23a   :  { %1718 = vst [vmem:[#allocation8 + $0x40] sm:$0xff] %v1672_v28  ;;  %v1949_v12 = vadd.f32 %v1948_v19, %v1947_v43  ;;  %v1870_v63 = vpop.f32.mrf.mxu0 }
 0x23b   :  { %v1950_v38 = vpop.f32.mrf.mxu1 }
 0x23c   :  { %v1677_v4 = vadd.f32 %v1949_v12, %v1869_v18  ;;  %v1871_v40 = vpop.f32.mrf.mxu0 }
 0x23d   :  { %v1872_v11 = vadd.f32 %v1871_v40, %v1870_v63  ;;  %v1951_v26 = vpop.f32.mrf.mxu1 }
 0x23e   :  { %1719 = vst [vmem:[#allocation8 + $0x48] sm:$0xff] %v1677_v4  ;;  %v1952_v53 = vadd.f32 %v1951_v26, %v1950_v38  ;;  %v1873_v61 = vpop.f32.mrf.mxu0 }
 0x23f   :  { %v1953_v5 = vpop.f32.mrf.mxu1 }
 0x240   :  { %v1682_v2 = vadd.f32 %v1952_v53, %v1872_v11  ;;  %v1874_v31 = vpop.f32.mrf.mxu0 }
 0x241   :  { %v1875_v30 = vadd.f32 %v1874_v31, %v1873_v61  ;;  %v1954_v47 = vpop.f32.mrf.mxu1 }
 0x242   :  { %1720 = vst [vmem:[#allocation8 + $0x50] sm:$0xff] %v1682_v2  ;;  %v1955_v49 = vadd.f32 %v1954_v47, %v1953_v5 }
 0x244   :  { %v1687_v62 = vadd.f32 %v1955_v49, %v1875_v30 }
 0x246   :  { %1721 = vst [vmem:[#allocation8 + $0x58] sm:$0xff] %v1687_v62 }
 0x252   :  { %v1876_v16 = vpop.f32.mrf.mxu0 }
 0x253   :  { %v1956_v1 = vpop.f32.mrf.mxu1 }
 0x254   :  { %v1877_v50 = vpop.f32.mrf.mxu0 }
 0x255   :  { %v1878_v59 = vadd.f32 %v1877_v50, %v1876_v16  ;;  %v1957_v15 = vpop.f32.mrf.mxu1 }
 0x256   :  { %v1958_v9 = vadd.f32 %v1957_v15, %v1956_v1  ;;  %v1879_v35 = vpop.f32.mrf.mxu0 }
 0x257   :  { %v1959_v56 = vpop.f32.mrf.mxu1 }
 0x258   :  { %v1692_v36 = vadd.f32 %v1958_v9, %v1878_v59  ;;  %v1880_v25 = vpop.f32.mrf.mxu0 }
 0x259   :  { %v1881_v37 = vadd.f32 %v1880_v25, %v1879_v35  ;;  %v1960_v41 = vpop.f32.mrf.mxu1 }
 0x25a   :  { %1722 = vst [vmem:[#allocation8 + $0x60] sm:$0xff] %v1692_v36  ;;  %v1961_v42 = vadd.f32 %v1960_v41, %v1959_v56  ;;  %v1882_v34 = vpop.f32.mrf.mxu0 }
 0x25b   :  { %v1962_v58 = vpop.f32.mrf.mxu1 }
 0x25c   :  { %v1697_v22 = vadd.f32 %v1961_v42, %v1881_v37  ;;  %v1883_v45 = vpop.f32.mrf.mxu0 }
 0x25d   :  { %v1884_v6 = vadd.f32 %v1883_v45, %v1882_v34  ;;  %v1963_v3 = vpop.f32.mrf.mxu1 }
 0x25e   :  { %1723 = vst [vmem:[#allocation8 + $0x68] sm:$0xff] %v1697_v22  ;;  %v1964_v51 = vadd.f32 %v1963_v3, %v1962_v58  ;;  %v1885_v17 = vpop.f32.mrf.mxu0 }
 0x25f   :  { %v1965_v20 = vpop.f32.mrf.mxu1 }
 0x260   :  { %v1702_v14 = vadd.f32 %v1964_v51, %v1884_v6  ;;  %v1886_v33 = vpop.f32.mrf.mxu0 }
 0x261   :  { %v1887_v21 = vadd.f32 %v1886_v33, %v1885_v17  ;;  %v1966_v44 = vpop.f32.mrf.mxu1 }
 0x262   :  { %1724 = vst [vmem:[#allocation8 + $0x70] sm:$0xff] %v1702_v14  ;;  %v1967_v29 = vadd.f32 %v1966_v44, %v1965_v20 }
 0x264   :  { %v1707_v24 = vadd.f32 %v1967_v29, %v1887_v21 }
 0x266   :  { %1725 = vst [vmem:[#allocation8 + $0x78] sm:$0xff] %v1707_v24 }
 0x267   :  { %2304 = shalt.err (!%p2301_p5)
}
 0x268   :  { %1737 = dma.vmem_to_hbm [thread:$0]  %s1732_s2, 2048, %s2896_s3, [#allocation4], %s2323_s22, %s2323_s22, %s2324_s23  }
 0x269   :  { %2317 = dma.done.wait [#allocation4], 2048  }
 0x26a   :  { %2318 = vsyncadd [#allocation4], 4294965248 }
 0x26b   :  { %1741 = vsyncpa [#allocation3], 1 }
 0x26c   :  { %1742 = vsyncpa [#allocation6], 1 }
 0x26d   :  { %1743 = vsyncpa [#allocation4], 1 }

</bundles_post_ra>
